<compile_context>
chip_gen: v7x
topology: tpu7x:2x2x1
jax: 0.10.0
libtpu: 0.0.40
codegen_flags: <defaults>
</compile_context>

<pallas_src>
import functools
import math

import numpy as np

import jax
import jax.numpy as jnp
from jax.experimental import pallas as pl
from jax.experimental.pallas import tpu as pltpu


# ----------------------------------------------------------------------------
# In-kernel math helpers
# ----------------------------------------------------------------------------

_SQRT_HALF = 0.7071067811865476


def _erf(x):
    # Abramowitz & Stegun 7.1.26 polynomial (max abs error ~1.5e-7), built only
    # from mul/add/div/exp so it is guaranteed to lower under Mosaic.
    # TODO(synk): switch to jax.lax.erf once exact-erf lowering is confirmed on
    # the target Mosaic build; numerics differ by < 1.5e-7 either way.
    a1, a2, a3, a4, a5 = (0.254829592, -0.284496736, 1.421413741,
                          -1.453152027, 1.061405429)
    p = 0.3275911
    ax = jnp.abs(x)
    t = 1.0 / (1.0 + p * ax)
    poly = ((((a5 * t + a4) * t + a3) * t + a2) * t + a1) * t
    y = 1.0 - poly * jnp.exp(-ax * ax)
    return jnp.where(x < 0.0, -y, y)


def _gelu(x):
    # Exact (erf-based) GELU, matching F.gelu's default.
    return 0.5 * x * (1.0 + _erf(x * _SQRT_HALF))


# ----------------------------------------------------------------------------
# Fused transformer kernel: one grid step == one (batch element, layer)
# ----------------------------------------------------------------------------

def _build_transformer_kernel(T, D, num_heads):
    dh = D // num_heads
    scale = 1.0 / math.sqrt(dh)

    def kernel(x_ref, cross_ref, pos_ref, sel_dh_ref, sel_hd_ref,
               ln1_g_ref, ln1_b_ref, wqkv_s_ref, wo_s_ref,
               lnc_g_ref, lnc_b_ref, wqkv_c_ref, wo_c_ref,
               ln2_g_ref, ln2_b_ref, w1_ref, w2_ref,
               out_ref):
        layer = pl.program_id(1)

        # Layer 0 initializes the residual stream (carried in the resident
        # output block across the whole "layer" grid axis) with x + pos_embed.
        @pl.when(layer == 0)
        def _():
            out_ref[...] = x_ref[...] + pos_ref[...]

        sel_dh = sel_dh_ref[...]   # (D, H): 1.0 where feature lane d belongs to head h
        sel_hd = sel_hd_ref[...]   # (H, D): transpose of the above

        def layernorm(x, g_ref, b_ref):
            mu = jnp.mean(x, axis=-1, keepdims=True)
            xc = x - mu
            var = jnp.mean(xc * xc, axis=-1, keepdims=True)   # biased, like nn.LayerNorm
            return xc * jax.lax.rsqrt(var + 1e-5) * g_ref[0] + b_ref[0]

        def attend(q_row, k, v):
            # q_row: (1, D); k/v: (KT, D).  Query length is 1 (decoder last
            # token) so the causal mask of the reference is identically zero.
            # Scores: VPU broadcast-multiply + per-head lane-segment reduce via
            # the head-indicator matmuls -- everything stays lane-dense, no
            # per-head reshape/transpose and no 1-row-per-head MXU passes.
            qk = (q_row * scale) * k                                          # (KT, D)
            s = jnp.dot(qk, sel_dh, preferred_element_type=jnp.float32)       # (KT, H)
            m = jnp.max(s, axis=0, keepdims=True)
            p = jnp.exp(s - m)
            denom = jnp.sum(p, axis=0, keepdims=True)
            p = p * pl.reciprocal(denom, approx=True)                         # softmax
            p_full = jnp.dot(p, sel_hd, preferred_element_type=jnp.float32)   # (KT, D)
            return jnp.sum(p_full * v, axis=0, keepdims=True)                 # (1, D)

        resid = out_ref[...]                                                  # (T, D)

        # -------- self attention (single fused QKV matmul) --------------------------
        xn = layernorm(resid, ln1_g_ref, ln1_b_ref)
        qkv = jnp.dot(xn, wqkv_s_ref[0], preferred_element_type=jnp.float32)  # (T, 3D)
        q_row = qkv[T - 1:T, 0:D]                 # decoder: query = last token only
        o = attend(q_row, qkv[:, D:2 * D], qkv[:, 2 * D:3 * D])
        o = jnp.dot(o, wo_s_ref[0], preferred_element_type=jnp.float32)       # (1, D)
        resid = resid + o                         # broadcast add over all T positions

        # -------- cross attention (fused K/V matmul; K/V from raw cross source) -----
        xn = layernorm(resid, lnc_g_ref, lnc_b_ref)
        wqkv_c = wqkv_c_ref[0]                                                # (D, 3D)
        q_row = jnp.dot(xn[T - 1:T, :], wqkv_c[:, 0:D],
                        preferred_element_type=jnp.float32)                   # (1, D)
        kv = jnp.dot(cross_ref[...], wqkv_c[:, D:3 * D],
                     preferred_element_type=jnp.float32)                      # (S, 2D)
        o = attend(q_row, kv[:, 0:D], kv[:, D:2 * D])
        o = jnp.dot(o, wo_c_ref[0], preferred_element_type=jnp.float32)
        resid = resid + o

        # -------- feed forward (GELU fused into the W1-matmul epilogue) -------------
        xn = layernorm(resid, ln2_g_ref, ln2_b_ref)
        h = _gelu(jnp.dot(xn, w1_ref[0], preferred_element_type=jnp.float32))  # (T, FF)
        y = jnp.dot(h, w2_ref[0], preferred_element_type=jnp.float32)          # (T, D)
        out_ref[...] = resid + y

    return kernel


# ----------------------------------------------------------------------------
# JAX wrapper: one pallas_call for the whole layer stack
# ----------------------------------------------------------------------------

@functools.partial(jax.jit, static_argnames=("num_heads",))
def transformer_forward(x, cross_src, pos, sel_dh, sel_hd, params, *, num_heads):
    B, T, D = x.shape
    S = cross_src.shape[1]
    depth = params["wqkv_s"].shape[0]
    FF = params["w1"].shape[2]
    H = num_heads

    kernel = _build_transformer_kernel(T, D, num_heads)

    batch_map = lambda b, l: (b, 0)
    const_map = lambda b, l: (0, 0)
    layer_map = lambda b, l: (l, 0, 0)

    in_specs = [
        pl.BlockSpec((T, D), batch_map),         # x            (flattened to (B*T, D))
        pl.BlockSpec((S, D), batch_map),         # cross source (flattened to (B*S, D))
        pl.BlockSpec((T, D), const_map),         # positional embedding
        pl.BlockSpec((D, H), const_map),         # head indicator (D, H)
        pl.BlockSpec((H, D), const_map),         # head indicator (H, D)
        pl.BlockSpec((1, 1, D), layer_map),      # ln1 gamma
        pl.BlockSpec((1, 1, D), layer_map),      # ln1 beta
        pl.BlockSpec((1, D, 3 * D), layer_map),  # Wqkv_self^T
        pl.BlockSpec((1, D, D), layer_map),      # Wout_self^T
        pl.BlockSpec((1, 1, D), layer_map),      # ln_cross gamma
        pl.BlockSpec((1, 1, D), layer_map),      # ln_cross beta
        pl.BlockSpec((1, D, 3 * D), layer_map),  # Wqkv_cross^T
        pl.BlockSpec((1, D, D), layer_map),      # Wout_cross^T
        pl.BlockSpec((1, 1, D), layer_map),      # ln2 gamma
        pl.BlockSpec((1, 1, D), layer_map),      # ln2 beta
        pl.BlockSpec((1, D, FF), layer_map),     # W1^T
        pl.BlockSpec((1, FF, D), layer_map),     # W2^T
    ]

    out = pl.pallas_call(
        kernel,
        out_shape=jax.ShapeDtypeStruct((B * T, D), jnp.float32),
        grid=(B, depth),
        in_specs=in_specs,
        out_specs=pl.BlockSpec((T, D), batch_map),
        compiler_params=pltpu.CompilerParams(
            dimension_semantics=("parallel", "arbitrary")),
    )(
        x.reshape(B * T, D), cross_src.reshape(B * S, D), pos, sel_dh, sel_hd,
        params["ln1_g"], params["ln1_b"], params["wqkv_s"], params["wo_s"],
        params["lnc_g"], params["lnc_b"], params["wqkv_c"], params["wo_c"],
        params["ln2_g"], params["ln2_b"], params["w1"], params["w2"],
    )
    return out.reshape(B, T, D)


# ----------------------------------------------------------------------------
# Constants precomputed once (input-independent)
# ----------------------------------------------------------------------------

def make_pos_embedding(T, D):
    """create_sin_embedding(arange(T), D): concat([cos, sin], -1) -> (T, D)."""
    half = D // 2
    positions = np.arange(T, dtype=np.float64).reshape(T, 1)
    adim = np.arange(half, dtype=np.float64).reshape(1, half)
    phase = positions / np.power(10000.0, adim / (half - 1))
    emb = np.concatenate([np.cos(phase), np.sin(phase)], axis=-1)
    return jnp.asarray(emb, dtype=jnp.float32)


def make_head_selectors(D, num_heads):
    """0/1 indicators mapping feature lanes to heads: (D, H) and (H, D)."""
    dh = D // num_heads
    head_of_lane = np.arange(D) // dh
    sel = (head_of_lane[:, None] == np.arange(num_heads)[None, :]).astype(np.float32)
    return jnp.asarray(sel), jnp.asarray(np.ascontiguousarray(sel.T))


# ----------------------------------------------------------------------------
# Deterministic parameter init (PyTorch layout) + one-time packing
# ----------------------------------------------------------------------------

def init_params(key, dim, ff_dim, depth):
    """Per-layer parameters in the PyTorch (out_features, in_features) layout."""
    def uniform(k, shape, fan_in):
        bound = 1.0 / math.sqrt(fan_in)
        return jax.random.uniform(k, shape, jnp.float32, -bound, bound)

    layers = []
    for _ in range(depth):
        key, k0, k1, k2, k3, k4, k5 = jax.random.split(key, 7)
        layers.append(dict(
            ln1_g=jnp.ones((dim,), jnp.float32), ln1_b=jnp.zeros((dim,), jnp.float32),
            Wqkv_s=uniform(k0, (3 * dim, dim), dim),
            Wo_s=uniform(k1, (dim, dim), dim),
            lnc_g=jnp.ones((dim,), jnp.float32), lnc_b=jnp.zeros((dim,), jnp.float32),
            Wqkv_c=uniform(k2, (3 * dim, dim), dim),
            Wo_c=uniform(k3, (dim, dim), dim),
            ln2_g=jnp.ones((dim,), jnp.float32), ln2_b=jnp.zeros((dim,), jnp.float32),
            W1=uniform(k4, (ff_dim, dim), dim),
            W2=uniform(k5, (dim, ff_dim), ff_dim),
        ))
    return layers


def pack_params(layers):
    """Stack per-layer params along a leading depth axis and pre-transpose all
    Linear weights ONCE (init time) into (in, out) layout so the kernel
    consumes them with plain matmuls — no per-forward transpose copies."""
    def stack(name):
        return jnp.stack([l[name] for l in layers], axis=0)

    return dict(
        ln1_g=stack("ln1_g")[:, None, :], ln1_b=stack("ln1_b")[:, None, :],
        wqkv_s=jnp.swapaxes(stack("Wqkv_s"), 1, 2),   # (depth, D, 3D)
        wo_s=jnp.swapaxes(stack("Wo_s"), 1, 2),       # (depth, D, D)
        lnc_g=stack("lnc_g")[:, None, :], lnc_b=stack("lnc_b")[:, None, :],
        wqkv_c=jnp.swapaxes(stack("Wqkv_c"), 1, 2),   # (depth, D, 3D)
        wo_c=jnp.swapaxes(stack("Wo_c"), 1, 2),       # (depth, D, D)
        ln2_g=stack("ln2_g")[:, None, :], ln2_b=stack("ln2_b")[:, None, :],
        w1=jnp.swapaxes(stack("W1"), 1, 2),           # (depth, D, FF)
        w2=jnp.swapaxes(stack("W2"), 1, 2),           # (depth, FF, D)
    )


# ----------------------------------------------------------------------------

if __name__ == "__main__":
    # Small shapes consistent with the module (head_dim kept at 64, as the
    # reference hardcodes it): dim=128, heads=2, ff=512, depth=2.
    B, T, S, D, HEADS, FF, DEPTH = 2, 8, 8, 128, 2, 512, 2

    key = jax.random.PRNGKey(0)
    kx, kc, kp = jax.random.split(key, 3)
    x = jax.random.normal(kx, (B, T, D), jnp.float32)
    cross_attention_src = jax.random.normal(kc, (B, S, D), jnp.float32)

    layers = init_params(kp, D, FF, DEPTH)
    params = pack_params(layers)                   # one-time stack + transpose
    pos = make_pos_embedding(T, D)                 # precomputed (input independent)
    sel_dh, sel_hd = make_head_selectors(D, HEADS)

    out = transformer_forward(x, cross_attention_src, pos, sel_dh, sel_hd,
                              params, num_heads=HEADS)
    out = jax.block_until_ready(out)
    assert out.shape == (B, T, D)
    assert bool(jnp.all(jnp.isfinite(out)))
    print("KERNEL_OK")
</pallas_src>

<mosaic_0001>
module attributes {stable_mosaic.version = 11 : i64} {
  func.func @kernel(%arg0: i32, %arg1: i32, %arg2: memref<8x128xf32, #tpu.memory_space<vmem>>, %arg3: memref<8x128xf32, #tpu.memory_space<vmem>>, %arg4: memref<8x128xf32, #tpu.memory_space<vmem>>, %arg5: memref<128x2xf32, #tpu.memory_space<vmem>>, %arg6: memref<2x128xf32, #tpu.memory_space<vmem>>, %arg7: memref<1x1x128xf32, #tpu.memory_space<vmem>>, %arg8: memref<1x1x128xf32, #tpu.memory_space<vmem>>, %arg9: memref<1x128x384xf32, #tpu.memory_space<vmem>>, %arg10: memref<1x128x128xf32, #tpu.memory_space<vmem>>, %arg11: memref<1x1x128xf32, #tpu.memory_space<vmem>>, %arg12: memref<1x1x128xf32, #tpu.memory_space<vmem>>, %arg13: memref<1x128x384xf32, #tpu.memory_space<vmem>>, %arg14: memref<1x128x128xf32, #tpu.memory_space<vmem>>, %arg15: memref<1x1x128xf32, #tpu.memory_space<vmem>>, %arg16: memref<1x1x128xf32, #tpu.memory_space<vmem>>, %arg17: memref<1x128x512xf32, #tpu.memory_space<vmem>>, %arg18: memref<1x512x128xf32, #tpu.memory_space<vmem>>, %arg19: memref<8x128xf32, #tpu.memory_space<vmem>>) attributes {dimension_semantics = [#tpu.dimension_semantics<parallel>, #tpu.dimension_semantics<arbitrary>], iteration_bounds = array<i64: 2, 2>, scalar_prefetch = 0 : i64, scratch_operands = 0 : i64, tpu.core_type = #tpu.core_type<tc>, window_params = [{transform_indices = @transform_0, window_bounds = array<i64: 8, 128>}, {transform_indices = @transform_1, window_bounds = array<i64: 8, 128>}, {pipeline_mode = #tpu.pipeline_mode<synchronous>, transform_indices = @transform_2, window_bounds = array<i64: 8, 128>}, {pipeline_mode = #tpu.pipeline_mode<synchronous>, transform_indices = @transform_3, window_bounds = array<i64: 128, 2>}, {pipeline_mode = #tpu.pipeline_mode<synchronous>, transform_indices = @transform_4, window_bounds = array<i64: 2, 128>}, {transform_indices = @transform_5, window_bounds = array<i64: 1, 1, 128>}, {transform_indices = @transform_6, window_bounds = array<i64: 1, 1, 128>}, {transform_indices = @transform_7, window_bounds = array<i64: 1, 128, 384>}, {transform_indices = @transform_8, window_bounds = array<i64: 1, 128, 128>}, {transform_indices = @transform_9, window_bounds = array<i64: 1, 1, 128>}, {transform_indices = @transform_10, window_bounds = array<i64: 1, 1, 128>}, {transform_indices = @transform_11, window_bounds = array<i64: 1, 128, 384>}, {transform_indices = @transform_12, window_bounds = array<i64: 1, 128, 128>}, {transform_indices = @transform_13, window_bounds = array<i64: 1, 1, 128>}, {transform_indices = @transform_14, window_bounds = array<i64: 1, 1, 128>}, {transform_indices = @transform_15, window_bounds = array<i64: 1, 128, 512>}, {transform_indices = @transform_16, window_bounds = array<i64: 1, 512, 128>}, {transform_indices = @transform_17, window_bounds = array<i64: 8, 128>}]} {
    %c0_i32 = arith.constant 0 : i32
    %0 = arith.cmpi eq, %arg1, %c0_i32 : i32
    %1 = arith.extui %0 : i1 to i32
    %c0_i32_0 = arith.constant 0 : i32
    %2 = arith.cmpi ne, %1, %c0_i32_0 : i32
    scf.if %2 {
      %c0_94 = arith.constant 0 : index
      %c0_95 = arith.constant 0 : index
      %190 = vector.load %arg2[%c0_94, %c0_95] : memref<8x128xf32, #tpu.memory_space<vmem>>, vector<8x128xf32>
      %c0_96 = arith.constant 0 : index
      %c0_97 = arith.constant 0 : index
      %191 = vector.load %arg4[%c0_96, %c0_97] : memref<8x128xf32, #tpu.memory_space<vmem>>, vector<8x128xf32>
      %192 = arith.addf %190, %191 : vector<8x128xf32>
      %c0_98 = arith.constant 0 : index
      %c0_99 = arith.constant 0 : index
      %193 = vector.load %arg19[%c0_98, %c0_99] : memref<8x128xf32, #tpu.memory_space<vmem>>, vector<8x128xf32>
      tpu.vector_store %arg19[%c0_98, %c0_99], %192 {strides = array<i32>} : memref<8x128xf32, #tpu.memory_space<vmem>>, vector<8x128xf32>,
    } else {
    }
    %c0 = arith.constant 0 : index
    %c0_1 = arith.constant 0 : index
    %3 = vector.load %arg5[%c0, %c0_1] : memref<128x2xf32, #tpu.memory_space<vmem>>, vector<128x2xf32>
    %c0_2 = arith.constant 0 : index
    %c0_3 = arith.constant 0 : index
    %4 = vector.load %arg6[%c0_2, %c0_3] : memref<2x128xf32, #tpu.memory_space<vmem>>, vector<2x128xf32>
    %c0_4 = arith.constant 0 : index
    %c0_5 = arith.constant 0 : index
    %5 = vector.load %arg19[%c0_4, %c0_5] : memref<8x128xf32, #tpu.memory_space<vmem>>, vector<8x128xf32>
    %cst = arith.constant dense<0.000000e+00> : vector<8xf32>
    %6 = vector.multi_reduction <add>, %5, %cst [1] : vector<8x128xf32> to vector<8xf32>
    %7 = vector.shape_cast %6 : vector<8xf32> to vector<8x1xf32>
    %cst_6 = arith.constant 1.280000e+02 : f32
    %8 = vector.broadcast %cst_6 : f32 to vector<8x1xf32>
    %9 = arith.divf %7, %8 : vector<8x1xf32>
    %10 = vector.broadcast %9 : vector<8x1xf32> to vector<8x128xf32>
    %11 = arith.subf %5, %10 : vector<8x128xf32>
    %12 = arith.mulf %11, %11 : vector<8x128xf32>
    %cst_7 = arith.constant dense<0.000000e+00> : vector<8xf32>
    %13 = vector.multi_reduction <add>, %12, %cst_7 [1] : vector<8x128xf32> to vector<8xf32>
    %14 = vector.shape_cast %13 : vector<8xf32> to vector<8x1xf32>
    %cst_8 = arith.constant 1.280000e+02 : f32
    %15 = vector.broadcast %cst_8 : f32 to vector<8x1xf32>
    %16 = arith.divf %14, %15 : vector<8x1xf32>
    %cst_9 = arith.constant 9.99999974E-6 : f32
    %17 = vector.broadcast %cst_9 : f32 to vector<8x1xf32>
    %18 = arith.addf %16, %17 : vector<8x1xf32>
    %19 = math.rsqrt %18 : vector<8x1xf32>
    %20 = vector.broadcast %19 : vector<8x1xf32> to vector<8x128xf32>
    %21 = arith.mulf %11, %20 : vector<8x128xf32>
    %c0_10 = arith.constant 0 : index
    %c0_11 = arith.constant 0 : index
    %c0_12 = arith.constant 0 : index
    %22 = vector.load %arg7[%c0_10, %c0_11, %c0_12] : memref<1x1x128xf32, #tpu.memory_space<vmem>>, vector<1x1x128xf32>
    %23 = vector.shape_cast %22 : vector<1x1x128xf32> to vector<1x128xf32>
    %24 = vector.broadcast %23 : vector<1x128xf32> to vector<8x128xf32>
    %25 = arith.mulf %21, %24 : vector<8x128xf32>
    %c0_13 = arith.constant 0 : index
    %c0_14 = arith.constant 0 : index
    %c0_15 = arith.constant 0 : index
    %26 = vector.load %arg8[%c0_13, %c0_14, %c0_15] : memref<1x1x128xf32, #tpu.memory_space<vmem>>, vector<1x1x128xf32>
    %27 = vector.shape_cast %26 : vector<1x1x128xf32> to vector<1x128xf32>
    %28 = vector.broadcast %27 : vector<1x128xf32> to vector<8x128xf32>
    %29 = arith.addf %25, %28 : vector<8x128xf32>
    %c0_16 = arith.constant 0 : index
    %c0_17 = arith.constant 0 : index
    %c0_18 = arith.constant 0 : index
    %30 = vector.load %arg9[%c0_16, %c0_17, %c0_18] : memref<1x128x384xf32, #tpu.memory_space<vmem>>, vector<1x128x384xf32>
    %31 = vector.shape_cast %30 : vector<1x128x384xf32> to vector<128x384xf32>
    %cst_19 = arith.constant dense<0.000000e+00> : vector<8x384xf32>
    %32 = tpu.matmul %29, %31, %cst_19 {dimension_numbers = #tpu.dot_dimension_numbers<[1], [0], [0], [1], [0, 0, 1, 1], [], []>} : vector<8x128xf32>, vector<128x384xf32>, vector<8x384xf32> -> vector<8x384xf32>
    %33 = vector.extract_strided_slice %32 {offsets = [7, 0], sizes = [1, 128], strides = [1, 1]} : vector<8x384xf32> to vector<1x128xf32>
    %34 = vector.extract_strided_slice %32 {offsets = [0, 128], sizes = [8, 128], strides = [1, 1]} : vector<8x384xf32> to vector<8x128xf32>
    %35 = vector.extract_strided_slice %32 {offsets = [0, 256], sizes = [8, 128], strides = [1, 1]} : vector<8x384xf32> to vector<8x128xf32>
    %cst_20 = arith.constant 1.250000e-01 : f32
    %36 = vector.broadcast %cst_20 : f32 to vector<1x128xf32>
    %37 = arith.mulf %33, %36 : vector<1x128xf32>
    %38 = vector.broadcast %37 : vector<1x128xf32> to vector<8x128xf32>
    %39 = arith.mulf %38, %34 : vector<8x128xf32>
    %cst_21 = arith.constant dense<0.000000e+00> : vector<8x2xf32>
    %40 = tpu.matmul %39, %3, %cst_21 {dimension_numbers = #tpu.dot_dimension_numbers<[1], [0], [0], [1], [0, 0, 1, 1], [], []>} : vector<8x128xf32>, vector<128x2xf32>, vector<8x2xf32> -> vector<8x2xf32>
    %cst_22 = arith.constant dense<0xFF800000> : vector<2xf32>
    %41 = vector.multi_reduction <maximumf>, %40, %cst_22 [0] : vector<8x2xf32> to vector<2xf32>
    %42 = vector.shape_cast %41 : vector<2xf32> to vector<1x2xf32>
    %43 = vector.broadcast %42 : vector<1x2xf32> to vector<8x2xf32>
    %44 = arith.subf %40, %43 : vector<8x2xf32>
    %45 = math.exp %44 : vector<8x2xf32>
    %cst_23 = arith.constant dense<0.000000e+00> : vector<2xf32>
    %46 = vector.multi_reduction <add>, %45, %cst_23 [0] : vector<8x2xf32> to vector<2xf32>
    %47 = vector.shape_cast %46 : vector<2xf32> to vector<1x2xf32>
    %48 = tpu.reciprocal %47 {approx = true} : vector<1x2xf32> -> vector<1x2xf32>
    %49 = vector.broadcast %48 : vector<1x2xf32> to vector<8x2xf32>
    %50 = arith.mulf %45, %49 : vector<8x2xf32>
    %cst_24 = arith.constant dense<0.000000e+00> : vector<8x128xf32>
    %51 = tpu.matmul %50, %4, %cst_24 {dimension_numbers = #tpu.dot_dimension_numbers<[1], [0], [0], [1], [0, 0, 1, 1], [], []>} : vector<8x2xf32>, vector<2x128xf32>, vector<8x128xf32> -> vector<8x128xf32>
    %52 = arith.mulf %51, %35 : vector<8x128xf32>
    %cst_25 = arith.constant dense<0.000000e+00> : vector<128xf32>
    %53 = vector.multi_reduction <add>, %52, %cst_25 [0] : vector<8x128xf32> to vector<128xf32>
    %54 = vector.shape_cast %53 : vector<128xf32> to vector<1x128xf32>
    %c0_26 = arith.constant 0 : index
    %c0_27 = arith.constant 0 : index
    %c0_28 = arith.constant 0 : index
    %55 = vector.load %arg10[%c0_26, %c0_27, %c0_28] : memref<1x128x128xf32, #tpu.memory_space<vmem>>, vector<1x128x128xf32>
    %56 = vector.shape_cast %55 : vector<1x128x128xf32> to vector<128x128xf32>
    %cst_29 = arith.constant dense<0.000000e+00> : vector<1x128xf32>
    %57 = tpu.matmul %54, %56, %cst_29 {dimension_numbers = #tpu.dot_dimension_numbers<[1], [0], [0], [1], [0, 0, 1, 1], [], []>} : vector<1x128xf32>, vector<128x128xf32>, vector<1x128xf32> -> vector<1x128xf32>
    %58 = vector.broadcast %57 : vector<1x128xf32> to vector<8x128xf32>
    %59 = arith.addf %5, %58 : vector<8x128xf32>
    %cst_30 = arith.constant dense<0.000000e+00> : vector<8xf32>
    %60 = vector.multi_reduction <add>, %59, %cst_30 [1] : vector<8x128xf32> to vector<8xf32>
    %61 = vector.shape_cast %60 : vector<8xf32> to vector<8x1xf32>
    %cst_31 = arith.constant 1.280000e+02 : f32
    %62 = vector.broadcast %cst_31 : f32 to vector<8x1xf32>
    %63 = arith.divf %61, %62 : vector<8x1xf32>
    %64 = vector.broadcast %63 : vector<8x1xf32> to vector<8x128xf32>
    %65 = arith.subf %59, %64 : vector<8x128xf32>
    %66 = arith.mulf %65, %65 : vector<8x128xf32>
    %cst_32 = arith.constant dense<0.000000e+00> : vector<8xf32>
    %67 = vector.multi_reduction <add>, %66, %cst_32 [1] : vector<8x128xf32> to vector<8xf32>
    %68 = vector.shape_cast %67 : vector<8xf32> to vector<8x1xf32>
    %cst_33 = arith.constant 1.280000e+02 : f32
    %69 = vector.broadcast %cst_33 : f32 to vector<8x1xf32>
    %70 = arith.divf %68, %69 : vector<8x1xf32>
    %cst_34 = arith.constant 9.99999974E-6 : f32
    %71 = vector.broadcast %cst_34 : f32 to vector<8x1xf32>
    %72 = arith.addf %70, %71 : vector<8x1xf32>
    %73 = math.rsqrt %72 : vector<8x1xf32>
    %74 = vector.broadcast %73 : vector<8x1xf32> to vector<8x128xf32>
    %75 = arith.mulf %65, %74 : vector<8x128xf32>
    %c0_35 = arith.constant 0 : index
    %c0_36 = arith.constant 0 : index
    %c0_37 = arith.constant 0 : index
    %76 = vector.load %arg11[%c0_35, %c0_36, %c0_37] : memref<1x1x128xf32, #tpu.memory_space<vmem>>, vector<1x1x128xf32>
    %77 = vector.shape_cast %76 : vector<1x1x128xf32> to vector<1x128xf32>
    %78 = vector.broadcast %77 : vector<1x128xf32> to vector<8x128xf32>
    %79 = arith.mulf %75, %78 : vector<8x128xf32>
    %c0_38 = arith.constant 0 : index
    %c0_39 = arith.constant 0 : index
    %c0_40 = arith.constant 0 : index
    %80 = vector.load %arg12[%c0_38, %c0_39, %c0_40] : memref<1x1x128xf32, #tpu.memory_space<vmem>>, vector<1x1x128xf32>
    %81 = vector.shape_cast %80 : vector<1x1x128xf32> to vector<1x128xf32>
    %82 = vector.broadcast %81 : vector<1x128xf32> to vector<8x128xf32>
    %83 = arith.addf %79, %82 : vector<8x128xf32>
    %c0_41 = arith.constant 0 : index
    %c0_42 = arith.constant 0 : index
    %c0_43 = arith.constant 0 : index
    %84 = vector.load %arg13[%c0_41, %c0_42, %c0_43] : memref<1x128x384xf32, #tpu.memory_space<vmem>>, vector<1x128x384xf32>
    %85 = vector.shape_cast %84 : vector<1x128x384xf32> to vector<128x384xf32>
    %86 = vector.extract_strided_slice %83 {offsets = [7, 0], sizes = [1, 128], strides = [1, 1]} : vector<8x128xf32> to vector<1x128xf32>
    %87 = vector.extract_strided_slice %85 {offsets = [0, 0], sizes = [128, 128], strides = [1, 1]} : vector<128x384xf32> to vector<128x128xf32>
    %cst_44 = arith.constant dense<0.000000e+00> : vector<1x128xf32>
    %88 = tpu.matmul %86, %87, %cst_44 {dimension_numbers = #tpu.dot_dimension_numbers<[1], [0], [0], [1], [0, 0, 1, 1], [], []>} : vector<1x128xf32>, vector<128x128xf32>, vector<1x128xf32> -> vector<1x128xf32>
    %c0_45 = arith.constant 0 : index
    %c0_46 = arith.constant 0 : index
    %89 = vector.load %arg3[%c0_45, %c0_46] : memref<8x128xf32, #tpu.memory_space<vmem>>, vector<8x128xf32>
    %90 = vector.extract_strided_slice %85 {offsets = [0, 128], sizes = [128, 256], strides = [1, 1]} : vector<128x384xf32> to vector<128x256xf32>
    %cst_47 = arith.constant dense<0.000000e+00> : vector<8x256xf32>
    %91 = tpu.matmul %89, %90, %cst_47 {dimension_numbers = #tpu.dot_dimension_numbers<[1], [0], [0], [1], [0, 0, 1, 1], [], []>} : vector<8x128xf32>, vector<128x256xf32>, vector<8x256xf32> -> vector<8x256xf32>
    %92 = vector.extract_strided_slice %91 {offsets = [0, 0], sizes = [8, 128], strides = [1, 1]} : vector<8x256xf32> to vector<8x128xf32>
    %93 = vector.extract_strided_slice %91 {offsets = [0, 128], sizes = [8, 128], strides = [1, 1]} : vector<8x256xf32> to vector<8x128xf32>
    %cst_48 = arith.constant 1.250000e-01 : f32
    %94 = vector.broadcast %cst_48 : f32 to vector<1x128xf32>
    %95 = arith.mulf %88, %94 : vector<1x128xf32>
    %96 = vector.broadcast %95 : vector<1x128xf32> to vector<8x128xf32>
    %97 = arith.mulf %96, %92 : vector<8x128xf32>
    %cst_49 = arith.constant dense<0.000000e+00> : vector<8x2xf32>
    %98 = tpu.matmul %97, %3, %cst_49 {dimension_numbers = #tpu.dot_dimension_numbers<[1], [0], [0], [1], [0, 0, 1, 1], [], []>} : vector<8x128xf32>, vector<128x2xf32>, vector<8x2xf32> -> vector<8x2xf32>
    %cst_50 = arith.constant dense<0xFF800000> : vector<2xf32>
    %99 = vector.multi_reduction <maximumf>, %98, %cst_50 [0] : vector<8x2xf32> to vector<2xf32>
    %100 = vector.shape_cast %99 : vector<2xf32> to vector<1x2xf32>
    %101 = vector.broadcast %100 : vector<1x2xf32> to vector<8x2xf32>
    %102 = arith.subf %98, %101 : vector<8x2xf32>
    %103 = math.exp %102 : vector<8x2xf32>
    %cst_51 = arith.constant dense<0.000000e+00> : vector<2xf32>
    %104 = vector.multi_reduction <add>, %103, %cst_51 [0] : vector<8x2xf32> to vector<2xf32>
    %105 = vector.shape_cast %104 : vector<2xf32> to vector<1x2xf32>
    %106 = tpu.reciprocal %105 {approx = true} : vector<1x2xf32> -> vector<1x2xf32>
    %107 = vector.broadcast %106 : vector<1x2xf32> to vector<8x2xf32>
    %108 = arith.mulf %103, %107 : vector<8x2xf32>
    %cst_52 = arith.constant dense<0.000000e+00> : vector<8x128xf32>
    %109 = tpu.matmul %108, %4, %cst_52 {dimension_numbers = #tpu.dot_dimension_numbers<[1], [0], [0], [1], [0, 0, 1, 1], [], []>} : vector<8x2xf32>, vector<2x128xf32>, vector<8x128xf32> -> vector<8x128xf32>
    %110 = arith.mulf %109, %93 : vector<8x128xf32>
    %cst_53 = arith.constant dense<0.000000e+00> : vector<128xf32>
    %111 = vector.multi_reduction <add>, %110, %cst_53 [0] : vector<8x128xf32> to vector<128xf32>
    %112 = vector.shape_cast %111 : vector<128xf32> to vector<1x128xf32>
    %c0_54 = arith.constant 0 : index
    %c0_55 = arith.constant 0 : index
    %c0_56 = arith.constant 0 : index
    %113 = vector.load %arg14[%c0_54, %c0_55, %c0_56] : memref<1x128x128xf32, #tpu.memory_space<vmem>>, vector<1x128x128xf32>
    %114 = vector.shape_cast %113 : vector<1x128x128xf32> to vector<128x128xf32>
    %cst_57 = arith.constant dense<0.000000e+00> : vector<1x128xf32>
    %115 = tpu.matmul %112, %114, %cst_57 {dimension_numbers = #tpu.dot_dimension_numbers<[1], [0], [0], [1], [0, 0, 1, 1], [], []>} : vector<1x128xf32>, vector<128x128xf32>, vector<1x128xf32> -> vector<1x128xf32>
    %116 = vector.broadcast %115 : vector<1x128xf32> to vector<8x128xf32>
    %117 = arith.addf %59, %116 : vector<8x128xf32>
    %cst_58 = arith.constant dense<0.000000e+00> : vector<8xf32>
    %118 = vector.multi_reduction <add>, %117, %cst_58 [1] : vector<8x128xf32> to vector<8xf32>
    %119 = vector.shape_cast %118 : vector<8xf32> to vector<8x1xf32>
    %cst_59 = arith.constant 1.280000e+02 : f32
    %120 = vector.broadcast %cst_59 : f32 to vector<8x1xf32>
    %121 = arith.divf %119, %120 : vector<8x1xf32>
    %122 = vector.broadcast %121 : vector<8x1xf32> to vector<8x128xf32>
    %123 = arith.subf %117, %122 : vector<8x128xf32>
    %124 = arith.mulf %123, %123 : vector<8x128xf32>
    %cst_60 = arith.constant dense<0.000000e+00> : vector<8xf32>
    %125 = vector.multi_reduction <add>, %124, %cst_60 [1] : vector<8x128xf32> to vector<8xf32>
    %126 = vector.shape_cast %125 : vector<8xf32> to vector<8x1xf32>
    %cst_61 = arith.constant 1.280000e+02 : f32
    %127 = vector.broadcast %cst_61 : f32 to vector<8x1xf32>
    %128 = arith.divf %126, %127 : vector<8x1xf32>
    %cst_62 = arith.constant 9.99999974E-6 : f32
    %129 = vector.broadcast %cst_62 : f32 to vector<8x1xf32>
    %130 = arith.addf %128, %129 : vector<8x1xf32>
    %131 = math.rsqrt %130 : vector<8x1xf32>
    %132 = vector.broadcast %131 : vector<8x1xf32> to vector<8x128xf32>
    %133 = arith.mulf %123, %132 : vector<8x128xf32>
    %c0_63 = arith.constant 0 : index
    %c0_64 = arith.constant 0 : index
    %c0_65 = arith.constant 0 : index
    %134 = vector.load %arg15[%c0_63, %c0_64, %c0_65] : memref<1x1x128xf32, #tpu.memory_space<vmem>>, vector<1x1x128xf32>
    %135 = vector.shape_cast %134 : vector<1x1x128xf32> to vector<1x128xf32>
    %136 = vector.broadcast %135 : vector<1x128xf32> to vector<8x128xf32>
    %137 = arith.mulf %133, %136 : vector<8x128xf32>
    %c0_66 = arith.constant 0 : index
    %c0_67 = arith.constant 0 : index
    %c0_68 = arith.constant 0 : index
    %138 = vector.load %arg16[%c0_66, %c0_67, %c0_68] : memref<1x1x128xf32, #tpu.memory_space<vmem>>, vector<1x1x128xf32>
    %139 = vector.shape_cast %138 : vector<1x1x128xf32> to vector<1x128xf32>
    %140 = vector.broadcast %139 : vector<1x128xf32> to vector<8x128xf32>
    %141 = arith.addf %137, %140 : vector<8x128xf32>
    %c0_69 = arith.constant 0 : index
    %c0_70 = arith.constant 0 : index
    %c0_71 = arith.constant 0 : index
    %142 = vector.load %arg17[%c0_69, %c0_70, %c0_71] : memref<1x128x512xf32, #tpu.memory_space<vmem>>, vector<1x128x512xf32>
    %143 = vector.shape_cast %142 : vector<1x128x512xf32> to vector<128x512xf32>
    %cst_72 = arith.constant dense<0.000000e+00> : vector<8x512xf32>
    %144 = tpu.matmul %141, %143, %cst_72 {dimension_numbers = #tpu.dot_dimension_numbers<[1], [0], [0], [1], [0, 0, 1, 1], [], []>} : vector<8x128xf32>, vector<128x512xf32>, vector<8x512xf32> -> vector<8x512xf32>
    %cst_73 = arith.constant 5.000000e-01 : f32
    %145 = vector.broadcast %cst_73 : f32 to vector<8x512xf32>
    %146 = arith.mulf %145, %144 : vector<8x512xf32>
    %cst_74 = arith.constant 0.707106769 : f32
    %147 = vector.broadcast %cst_74 : f32 to vector<8x512xf32>
    %148 = arith.mulf %144, %147 : vector<8x512xf32>
    %149 = math.absf %148 : vector<8x512xf32>
    %cst_75 = arith.constant 0.327591091 : f32
    %150 = vector.broadcast %cst_75 : f32 to vector<8x512xf32>
    %151 = arith.mulf %150, %149 : vector<8x512xf32>
    %cst_76 = arith.constant 1.000000e+00 : f32
    %152 = vector.broadcast %cst_76 : f32 to vector<8x512xf32>
    %153 = arith.addf %152, %151 : vector<8x512xf32>
    %cst_77 = arith.constant 1.000000e+00 : f32
    %154 = vector.broadcast %cst_77 : f32 to vector<8x512xf32>
    %155 = arith.divf %154, %153 : vector<8x512xf32>
    %cst_78 = arith.constant 1.06140542 : f32
    %156 = vector.broadcast %cst_78 : f32 to vector<8x512xf32>
    %157 = arith.mulf %156, %155 : vector<8x512xf32>
    %cst_79 = arith.constant -1.45315206 : f32
    %158 = vector.broadcast %cst_79 : f32 to vector<8x512xf32>
    %159 = arith.addf %157, %158 : vector<8x512xf32>
    %160 = arith.mulf %159, %155 : vector<8x512xf32>
    %cst_80 = arith.constant 1.42141378 : f32
    %161 = vector.broadcast %cst_80 : f32 to vector<8x512xf32>
    %162 = arith.addf %160, %161 : vector<8x512xf32>
    %163 = arith.mulf %162, %155 : vector<8x512xf32>
    %cst_81 = arith.constant -0.284496725 : f32
    %164 = vector.broadcast %cst_81 : f32 to vector<8x512xf32>
    %165 = arith.addf %163, %164 : vector<8x512xf32>
    %166 = arith.mulf %165, %155 : vector<8x512xf32>
    %cst_82 = arith.constant 0.254829586 : f32
    %167 = vector.broadcast %cst_82 : f32 to vector<8x512xf32>
    %168 = arith.addf %166, %167 : vector<8x512xf32>
    %169 = arith.mulf %168, %155 : vector<8x512xf32>
    %cst_83 = arith.constant 0.000000e+00 : f32
    %170 = vector.broadcast %cst_83 : f32 to vector<8x512xf32>
    %171 = arith.subf %170, %149 : vector<8x512xf32>
    %172 = arith.mulf %171, %149 : vector<8x512xf32>
    %173 = math.exp %172 : vector<8x512xf32>
    %174 = arith.mulf %169, %173 : vector<8x512xf32>
    %cst_84 = arith.constant 1.000000e+00 : f32
    %175 = vector.broadcast %cst_84 : f32 to vector<8x512xf32>
    %176 = arith.subf %175, %174 : vector<8x512xf32>
    %cst_85 = arith.constant 0.000000e+00 : f32
    %177 = vector.broadcast %cst_85 : f32 to vector<8x512xf32>
    %178 = arith.cmpf olt, %148, %177 : vector<8x512xf32>
    %cst_86 = arith.constant 0.000000e+00 : f32
    %179 = vector.broadcast %cst_86 : f32 to vector<8x512xf32>
    %180 = arith.subf %179, %176 : vector<8x512xf32>
    %181 = arith.select %178, %180, %176 : vector<8x512xi1>, vector<8x512xf32>
    %cst_87 = arith.constant 1.000000e+00 : f32
    %182 = vector.broadcast %cst_87 : f32 to vector<8x512xf32>
    %183 = arith.addf %182, %181 : vector<8x512xf32>
    %184 = arith.mulf %146, %183 : vector<8x512xf32>
    %c0_88 = arith.constant 0 : index
    %c0_89 = arith.constant 0 : index
    %c0_90 = arith.constant 0 : index
    %185 = vector.load %arg18[%c0_88, %c0_89, %c0_90] : memref<1x512x128xf32, #tpu.memory_space<vmem>>, vector<1x512x128xf32>
    %186 = vector.shape_cast %185 : vector<1x512x128xf32> to vector<512x128xf32>
    %cst_91 = arith.constant dense<0.000000e+00> : vector<8x128xf32>
    %187 = tpu.matmul %184, %186, %cst_91 {dimension_numbers = #tpu.dot_dimension_numbers<[1], [0], [0], [1], [0, 0, 1, 1], [], []>} : vector<8x512xf32>, vector<512x128xf32>, vector<8x128xf32> -> vector<8x128xf32>
    %188 = arith.addf %117, %187 : vector<8x128xf32>
    %c0_92 = arith.constant 0 : index
    %c0_93 = arith.constant 0 : index
    %189 = vector.load %arg19[%c0_92, %c0_93] : memref<8x128xf32, #tpu.memory_space<vmem>>, vector<8x128xf32>
    tpu.vector_store %arg19[%c0_92, %c0_93], %188 {strides = array<i32>} : memref<8x128xf32, #tpu.memory_space<vmem>>, vector<8x128xf32>,
    return
  }
  func.func @transform_0(%arg0: i32, %arg1: i32) -> (i32, i32) {
    %c0_i32 = arith.constant 0 : i32
    %c0_i32_0 = arith.constant 0 : i32
    return %arg0, %c0_i32 : i32, i32
  }
  func.func @transform_1(%arg0: i32, %arg1: i32) -> (i32, i32) {
    %c0_i32 = arith.constant 0 : i32
    %c0_i32_0 = arith.constant 0 : i32
    return %arg0, %c0_i32 : i32, i32
  }
  func.func @transform_2(%arg0: i32, %arg1: i32) -> (i32, i32) {
    %c0_i32 = arith.constant 0 : i32
    %c0_i32_0 = arith.constant 0 : i32
    %c0_i32_1 = arith.constant 0 : i32
    return %c0_i32, %c0_i32_0 : i32, i32
  }
  func.func @transform_3(%arg0: i32, %arg1: i32) -> (i32, i32) {
    %c0_i32 = arith.constant 0 : i32
    %c0_i32_0 = arith.constant 0 : i32
    %c0_i32_1 = arith.constant 0 : i32
    return %c0_i32, %c0_i32_0 : i32, i32
  }
  func.func @transform_4(%arg0: i32, %arg1: i32) -> (i32, i32) {
    %c0_i32 = arith.constant 0 : i32
    %c0_i32_0 = arith.constant 0 : i32
    %c0_i32_1 = arith.constant 0 : i32
    return %c0_i32, %c0_i32_0 : i32, i32
  }
  func.func @transform_5(%arg0: i32, %arg1: i32) -> (i32, i32, i32) {
    %c0_i32 = arith.constant 0 : i32
    %c0_i32_0 = arith.constant 0 : i32
    %c0_i32_1 = arith.constant 0 : i32
    return %arg1, %c0_i32, %c0_i32_0 : i32, i32, i32
  }
  func.func @transform_6(%arg0: i32, %arg1: i32) -> (i32, i32, i32) {
    %c0_i32 = arith.constant 0 : i32
    %c0_i32_0 = arith.constant 0 : i32
    %c0_i32_1 = arith.constant 0 : i32
    return %arg1, %c0_i32, %c0_i32_0 : i32, i32, i32
  }
  func.func @transform_7(%arg0: i32, %arg1: i32) -> (i32, i32, i32) {
    %c0_i32 = arith.constant 0 : i32
    %c0_i32_0 = arith.constant 0 : i32
    %c0_i32_1 = arith.constant 0 : i32
    return %arg1, %c0_i32, %c0_i32_0 : i32, i32, i32
  }
  func.func @transform_8(%arg0: i32, %arg1: i32) -> (i32, i32, i32) {
    %c0_i32 = arith.constant 0 : i32
    %c0_i32_0 = arith.constant 0 : i32
    %c0_i32_1 = arith.constant 0 : i32
    return %arg1, %c0_i32, %c0_i32_0 : i32, i32, i32
  }
  func.func @transform_9(%arg0: i32, %arg1: i32) -> (i32, i32, i32) {
    %c0_i32 = arith.constant 0 : i32
    %c0_i32_0 = arith.constant 0 : i32
    %c0_i32_1 = arith.constant 0 : i32
    return %arg1, %c0_i32, %c0_i32_0 : i32, i32, i32
  }
  func.func @transform_10(%arg0: i32, %arg1: i32) -> (i32, i32, i32) {
    %c0_i32 = arith.constant 0 : i32
    %c0_i32_0 = arith.constant 0 : i32
    %c0_i32_1 = arith.constant 0 : i32
    return %arg1, %c0_i32, %c0_i32_0 : i32, i32, i32
  }
  func.func @transform_11(%arg0: i32, %arg1: i32) -> (i32, i32, i32) {
    %c0_i32 = arith.constant 0 : i32
    %c0_i32_0 = arith.constant 0 : i32
    %c0_i32_1 = arith.constant 0 : i32
    return %arg1, %c0_i32, %c0_i32_0 : i32, i32, i32
  }
  func.func @transform_12(%arg0: i32, %arg1: i32) -> (i32, i32, i32) {
    %c0_i32 = arith.constant 0 : i32
    %c0_i32_0 = arith.constant 0 : i32
    %c0_i32_1 = arith.constant 0 : i32
    return %arg1, %c0_i32, %c0_i32_0 : i32, i32, i32
  }
  func.func @transform_13(%arg0: i32, %arg1: i32) -> (i32, i32, i32) {
    %c0_i32 = arith.constant 0 : i32
    %c0_i32_0 = arith.constant 0 : i32
    %c0_i32_1 = arith.constant 0 : i32
    return %arg1, %c0_i32, %c0_i32_0 : i32, i32, i32
  }
  func.func @transform_14(%arg0: i32, %arg1: i32) -> (i32, i32, i32) {
    %c0_i32 = arith.constant 0 : i32
    %c0_i32_0 = arith.constant 0 : i32
    %c0_i32_1 = arith.constant 0 : i32
    return %arg1, %c0_i32, %c0_i32_0 : i32, i32, i32
  }
  func.func @transform_15(%arg0: i32, %arg1: i32) -> (i32, i32, i32) {
    %c0_i32 = arith.constant 0 : i32
    %c0_i32_0 = arith.constant 0 : i32
    %c0_i32_1 = arith.constant 0 : i32
    return %arg1, %c0_i32, %c0_i32_0 : i32, i32, i32
  }
  func.func @transform_16(%arg0: i32, %arg1: i32) -> (i32, i32, i32) {
    %c0_i32 = arith.constant 0 : i32
    %c0_i32_0 = arith.constant 0 : i32
    %c0_i32_1 = arith.constant 0 : i32
    return %arg1, %c0_i32, %c0_i32_0 : i32, i32, i32
  }
  func.func @transform_17(%arg0: i32, %arg1: i32) -> (i32, i32) {
    %c0_i32 = arith.constant 0 : i32
    %c0_i32_0 = arith.constant 0 : i32
    return %arg0, %c0_i32 : i32, i32
  }
}

</mosaic_0001>

<bundles_post_ra>
// kernel: transformer_forward.1
= control target key start
LH: loop header
LB: loop body
LE: loop exit
PB: predicated region body
PF: predicated region fallthrough
CT: control target
= control target key end

     0   :  { %s5124_s0 = inlined_call_operand.vmem [shape: f32[16,128], index: 0, kind: input, shape index: {}]   ;;  %s5125_s1 = inlined_call_operand.vmem [shape: f32[16,128], index: 1, kind: input, shape index: {}]   ;;  %s5126_s2 = inlined_call_operand.vmem [shape: f32[8,128], index: 2, kind: input, shape index: {}]   ;;  %s5127_s3 = inlined_call_operand.vmem [shape: f32[128,2], index: 3, kind: input, shape index: {}]   ;;  %s5128_s4 = inlined_call_operand.vmem [shape: f32[2,128], index: 4, kind: input, shape index: {}]   ;;  %s5129_s5 = inlined_call_operand.vmem [shape: f32[2,1,128], index: 5, kind: input, shape index: {}]   ;;  %s5130_s6 = inlined_call_operand.vmem [shape: f32[2,1,128], index: 6, kind: input, shape index: {}]   ;;  %s5131_s7 = inlined_call_operand.hbm [shape: f32[2,128,384], index: 7, kind: input, shape index: {}]   ;;  %s5132_s8 = inlined_call_operand.hbm [shape: f32[2,128,128], index: 8, kind: input, shape index: {}]   ;;  %s5133_s9 = inlined_call_operand.vmem [shape: f32[2,1,128], index: 9, kind: input, shape index: {}]   ;;  %s5134_s10 = inlined_call_operand.vmem [shape: f32[2,1,128], index: 10, kind: input, shape index: {}]   ;;  %s5135_s11 = inlined_call_operand.hbm [shape: f32[2,128,384], index: 11, kind: input, shape index: {}]   ;;  %s5136_s12 = inlined_call_operand.hbm [shape: f32[2,128,128], index: 12, kind: input, shape index: {}]   ;;  %s5137_s13 = inlined_call_operand.vmem [shape: f32[2,1,128], index: 13, kind: input, shape index: {}]   ;;  %s5138_s14 = inlined_call_operand.vmem [shape: f32[2,1,128], index: 14, kind: input, shape index: {}]   ;;  %s5139_s15 = inlined_call_operand.hbm [shape: f32[2,128,512], index: 15, kind: input, shape index: {}]   ;;  %s5140_s16 = inlined_call_operand.hbm [shape: f32[2,512,128], index: 16, kind: input, shape index: {}]   ;;  %s5141_s17 = inlined_call_operand.hbm [shape: f32[16,128], index: 17, kind: output, shape index: {}]  }
   0x1   :  { %5173 = sst [smem:[#allocation37_spill]] %s5124_s0 }
   0x2   :  { %5174 = sst [smem:[#allocation38_spill]] %s5125_s1 }
   0x3   :  { %5175 = sst [smem:[#allocation39_spill]] %s5126_s2 }
   0x4   :  { %5176 = sst [smem:[#allocation40_spill]] %s5127_s3 }
   0x5   :  { %5177 = sst [smem:[#allocation41_spill]] %s5128_s4 }
   0x6   :  { %5178 = sst [smem:[#allocation42_spill]] %s5129_s5 }
   0x7   :  { %5179 = sst [smem:[#allocation43_spill]] %s5130_s6 }
   0x8   :  { %5180 = sst [smem:[#allocation44_spill]] %s5131_s7 }
   0x9   :  { %5181 = sst [smem:[#allocation45_spill]] %s5132_s8 }
   0xa   :  { %5182 = sst [smem:[#allocation46_spill]] %s5133_s9 }
   0xb   :  { %5183 = sst [smem:[#allocation47_spill]] %s5134_s10 }
   0xc   :  { %5184 = sst [smem:[#allocation48_spill]] %s5135_s11 }
   0xd   :  { %5185 = sst [smem:[#allocation49_spill]] %s5136_s12 }
   0xe   :  { %5186 = sst [smem:[#allocation50_spill]] %s5137_s13 }
   0xf   :  { %5187 = sst [smem:[#allocation51_spill]] %s5138_s14 }
  0x10   :  { %5188 = sst [smem:[#allocation52_spill]] %s5139_s15 }
  0x11   :  { %5189 = sst [smem:[#allocation53_spill]] %s5140_s16 }
  0x12   :  { %5190 = sst [smem:[#allocation54_spill]] %s5141_s17 }
  0x13   :  { %22 = vsyncpa [#allocation3], 0 }
  0x14   :  { %24 = vsyncpa [#allocation3 + $0x1], 0 }
  0x15   :  { %25 = vsyncpa [#allocation6], 0 }
  0x16   :  { %27 = vsyncpa [#allocation6 + $0x1], 0 }
  0x17   :  { %28 = vsyncpa [#allocation9], 0 }
  0x18   :  { %30 = vsyncpa [#allocation9 + $0x1], 0 }
  0x19   :  { %31 = vsyncpa [#allocation12], 0 }
  0x1a   :  { %33 = vsyncpa [#allocation12 + $0x1], 0 }
  0x1b   :  { %34 = vsyncpa [#allocation4], 0 }
  0x1c   :  { %36 = vsyncpa [#allocation4 + $0x1], 0  ;;  %s4090_s24 = smov 0   ;;  %s4092_s25 = smov 0  }
  0x1d   :  { %s4094_s26 = smov 0   ;;  %s4096_s27 = smov 0  }
  0x1e   :  { %s4098_s28 = smov 0   ;;  %s4100_s29 = smov 0  }
  0x1f   :  { %s4102_s0 = smov 0   ;;  %s4104_s30 = smov 0  }
  0x20   :  { %s4106_s18 = smov 0   ;;  %s4108_s19 = smov 0  }
  0x21   :  { %s4110_s1 = smov 0  }
  0x22 LB: > { %5191 = sst [smem:[#allocation19_spill]] %s3942_s24  ;;  %s4144_s20 = sadd.s32 4294967295, %s3982_s1   ;;  %s3982_s1 = sphi %s4110_s1, %s42_s1   ;;  %s3978_s19 = sphi %s4108_s19, %s5273_s19   ;;  %s3974_s18 = sphi %s4106_s18, %s5272_s18   ;;  %s3970_s30 = sphi %s4104_s30, %s5271_s30   ;;  %s3966_s0 = sphi %s4102_s0, %s5270_s0   ;;  %s3962_s29 = sphi %s4100_s29, %s5269_s29   ;;  %s3958_s28 = sphi %s4098_s28, %s5268_s28   ;;  %s3954_s27 = sphi %s4096_s27, %s5267_s27   ;;  %s3950_s26 = sphi %s4094_s26, %s5266_s26   ;;  %s3946_s25 = sphi %s4092_s25, %s5265_s25   ;;  %s3942_s24 = sphi %s4090_s24, %s5264_s24  }
  0x23   : > { %5192 = sst [smem:[#allocation20_spill]] %s3946_s25  ;;  %s2721_s21 = sadd.s32 4294967294, %s3982_s1  }
  0x24   : > { %5193 = sst [smem:[#allocation21_spill]] %s3950_s26  ;;  %s51_s22 = sadd.s32 1, %s3974_s18 }
  0x25   : > { %5194 = sst [smem:[#allocation22_spill]] %s3958_s28  ;;  %s54_s23 = sadd.s32 1, %s3978_s19 }
  0x26   : > { %5195 = sst [smem:[#allocation23_spill]] %s3962_s29  ;;  %p52_p0 = scmp.ge.s32.totalorder %s51_s22, 2 }
  0x27   : > { %5196 = sst [smem:[#allocation24_spill]] %s3966_s0  ;;  %s228_s17 = sadd.s32 1, %s3962_s29 }
  0x28   : > { %5197 = sst [smem:[#allocation25_spill]] %s3970_s30  ;;  %p235_p1 = scmp.ne.s32.totalorder %s3962_s29, %s3958_s28 }
  0x29   : > { %5198 = sst [smem:[#allocation26_spill]] %s3974_s18  ;;  %p236_p2 = scmp.eq.s32.totalorder %s3982_s1, 0 }
  0x2a   : > { %5199 = sst [smem:[#allocation27_spill]] %s3978_s19  ;;  %s5275_s22 = smov (%p52_p0, %s51_s22), 0 }
  0x2b   : > { %5200 = sst [smem:[#allocation28_spill]] %s3982_s1  ;;  %s5277_s23 = smov (!%p52_p0, %s54_s23), %s3978_s19 }
  0x2c   : > { %5201 = sst [smem:[#allocation29_spill]] %s5275_s22  ;;  %s225_s4 = ssub.s32 %s3974_s18, %s5275_s22 }
  0x2d   : > { %p4158_p3 = por %p236_p2, %p235_p1  ;;  %p56_p4 = scmp.ge.s32.totalorder %s5277_s23, 2 }
  0x2e   : > { %p226_p5 = scmp.eq.s32.totalorder %s225_s4, 0  ;;  %p241_p6 = scmp.ne.s32.totalorder %s3958_s28, %s3954_s27 }
  0x2f   : > { %p242_p7 = scmp.eq.s32.totalorder %s4144_s20, 0  ;;  %s5279_s23 = smov (%p56_p4, %s5277_s23), 0 }
  0x30   : > { %5203 = sst [smem:[#allocation30_spill]] %s5279_s23  ;;  %s485_s14 = ssub.s32 %s3978_s19, %s5279_s23 }
  0x31   : > { %s4167_s2 = scalar_select %p226_p5, %s3962_s29, %s228_s17  }
  0x32   : > { %p4169_p8 = por %p242_p7, %p241_p6  ;;  %p486_p9 = scmp.eq.s32.totalorder %s485_s14, 0 }
  0x33   : > { %5204 = sst [smem:[#allocation31_spill]] %s4167_s2  ;;  %s488_s13 = sadd.s32 1, %s3950_s26 }
  0x34   : > { %s5205_s22 = scalar_select %p4169_p8, 1, 0 }
  0x35   : > { %p498_p10 = scmp.ne.s32.totalorder %s3950_s26, %s3946_s25  ;;  %p499_p11 = scmp.eq.s32.totalorder %s4144_s20, 3 }
  0x36   : > { %s4180_s4 = scalar_select %p486_p9, %s3950_s26, %s488_s13  }
  0x37   : > { %p4182_p12 = por %p499_p11, %p498_p10  ;;  %p504_p13 = scmp.ne.s32.totalorder %s3946_s25, %s3942_s24 }
  0x38   : > { %5206 = sst [smem:[#allocation32_spill]] %s4180_s4  ;;  %p505_p0 = scmp.eq.s32.totalorder %s2721_s21, 3 }
  0x39   : > { %s5207_s27 = scalar_select %p4182_p12, 1, 0 }
  0x3a   : > { %p3539_p1 = scmp.lt.s32.totalorder %s3982_s1, 4  ;;  %s4190_s17 = sand.u32 1, %s3962_s29  }
  0x3b   : > { %5208 = sst [smem:[#allocation33_spill]] %s5207_s27  ;;  %p4192_p2 = por %p505_p0, %p504_p13 }
  0x3c   : > { %p4199_p4 = pnand %p3539_p1, %p4158_p3  ;;  %s5151_s19 = sshll.u32 %s4190_s17, 7 }
  0x3d   : > { %s5209_s14 = scalar_select %p4192_p2, 1, 0 }
  0x3e   : > { %s5152_s2 = sshll.u32 %s3974_s18, 11  ;;  %s5212_s8 = sld [smem:[#allocation45_spill]] }
  0x3f   : > { %5210 = sst [smem:[#allocation34_spill]] %s5209_s14  ;;  %s585_s23 = scalar_lea.vmem [#allocation5], %s5151_s19 }
  0x40   : > { %s592_s3 = sshll.u32 %s585_s23, 4  ;;  %s5213_s26 = sand.u32 1, %s3982_s1   ;;  %s4214_s3 = int_to_ptr.vmem [resolvable:$true] %s592_s3 }
  0x41   : > { %s4219_s14 = scalar_lea.sflag [#allocation6], %s5213_s26  ;;  %p4225_p6 = pneg %p4199_p4 }
  0x44   : > { %s4210_s29 = scalar_lea.hbm %s5212_s8, %s5152_s2  ;;  %s3673_s23 = scalar_lea.hbm %s5212_s8, 4096 }
  0x45   : > { %s3668_s24 = scalar_lea.hbm %s4210_s29, 2048  ;;  %p3674_p10 = scmp.lt.u32.totalorder %s4210_s29, %s5212_s8 }
  0x46   : > { %p3669_p5 = scmp.ne.s32.totalorder %s4210_s29, %s3668_s24  ;;  %p3675_p11 = scmp.lt.u32.totalorder %s3673_s23, %s3668_s24 }
  0x47   : > { %p3677_p0 = scmp.lt.u32.totalorder %s3668_s24, %s4210_s29 }
  0x48   : > { %p3671_p7 = pnand %p4225_p6, %p3669_p5  ;;  %p3676_p13 = por %p3675_p11, %p3674_p10 }
  0x4a   : > { %p3672_p9 = pneg %p3671_p7  ;;  %p3678_p1 = por %p3677_p0, %p3676_p13 }
  0x4c   : > { %p3679_p3 = pnand %p3678_p1, %p3672_p9 }
  0x4e   : > { %3682 = shalt.err (!%p3679_p3)
}
  0x4f   : > { %s3683_s26 = scalar_lea.vmem %s4214_s3, 2048  ;;  %s3984_s19 = smov [#allocation5]  }
  0x50   : > { %p3684_p5 = scmp.ne.s32.totalorder %s4214_s3, %s3683_s26  ;;  %s3688_s21 = sshll.u32 %s3984_s19, 4  ;;  %s3689_s21 = int_to_ptr.vmem [resolvable:$false] %s3688_s21 }
  0x51   : > { %s3690_s2 = scalar_lea.vmem %s3689_s21, 4096  ;;  %p3691_p12 = scmp.lt.s32.totalorder %s4214_s3, %s3689_s21 }
  0x52   : > { %p3686_p7 = pnand %p3684_p5, %p4225_p6  ;;  %p3692_p8 = scmp.lt.s32.totalorder %s3690_s2, %s3683_s26 }
  0x54   : > { %p3687_p2 = pneg %p3686_p7  ;;  %p3693_p10 = por %p3692_p8, %p3691_p12 }
  0x56   : > { %p3694_p11 = pnand %p3693_p10, %p3687_p2 }
  0x58   : > { %3697 = shalt.err (!%p3694_p11)
}
  0x59   : > { %s5157_s24 = smov 128   ;;  %s5159_s27 = smov 8  }
  0x5a   : > { %3522 = dma.hbm_to_vmem [thread:$0]  (!%p4199_p4), %s4210_s29, 2048, %s4214_s3, %s4219_s14, %s5157_s24, %s5157_s24, %s5159_s27  }
  0x5b   : > { %p708_p8 = scmp.lt.s32.totalorder %s3982_s1, 5  ;;  %s5215_s23 = sshll.u32 %s3974_s18, 11 }
  0x5c   : > { %s5216_s12 = sld [smem:[#allocation49_spill]]  ;;  %p5217_p12 = scmp.ge.s32.totalorder %s3982_s1, 1 }
  0x5d   : > { %s5219_s8 = sshll.u32 %s4190_s17, 7  ;;  %s5220_s29 = sand.u32 1, %s3982_s1  }
  0x5e   : > { %p4262_p2 = pnand %p5217_p12, %p708_p8  ;;  %s639_s10 = scalar_lea.vmem [#allocation8], %s5219_s8 }
  0x5f   : > { %s646_s9 = sshll.u32 %s639_s10, 4  ;;  %s4272_s3 = scalar_lea.sflag [#allocation9], %s5220_s29  ;;  %s4268_s9 = int_to_ptr.vmem [resolvable:$true] %s646_s9 }
  0x60   : > { %s5218_s2 = scalar_select %p4262_p2, 1, 0 }
  0x62   : > { %s4258_s21 = scalar_lea.hbm %s5216_s12, %s5215_s23  ;;  %s3703_s24 = scalar_lea.hbm %s5216_s12, 4096 }
  0x63   : > { %s3698_s26 = scalar_lea.hbm %s4258_s21, 2048  ;;  %p3704_p0 = scmp.lt.u32.totalorder %s4258_s21, %s5216_s12 }
  0x64   : > { %p3699_p3 = scmp.ne.s32.totalorder %s4258_s21, %s3698_s26  ;;  %p3705_p1 = scmp.lt.u32.totalorder %s3703_s24, %s3698_s26 }
  0x65   : > { %p3707_p7 = scmp.lt.u32.totalorder %s3698_s26, %s4258_s21 }
  0x66   : > { %p3701_p9 = pnand %p3699_p3, %p4225_p6  ;;  %p3706_p5 = por %p3705_p1, %p3704_p0 }
  0x68   : > { %p3702_p13 = pneg %p3701_p9  ;;  %p3708_p10 = por %p3707_p7, %p3706_p5 }
  0x6a   : > { %p3709_p11 = pnand %p3708_p10, %p3702_p13 }
  0x6c   : > { %3712 = shalt.err (!%p3709_p11)
}
  0x6d   : > { %s3713_s8 = scalar_lea.vmem %s4268_s9, 2048  ;;  %s3987_s10 = smov [#allocation8]  }
  0x6e   : > { %p3714_p8 = scmp.ne.s32.totalorder %s4268_s9, %s3713_s8  ;;  %s3718_s29 = sshll.u32 %s3987_s10, 4  ;;  %s3719_s29 = int_to_ptr.vmem [resolvable:$false] %s3718_s29 }
  0x6f   : > { %s3720_s6 = scalar_lea.vmem %s3719_s29, 4096  ;;  %p3721_p9 = scmp.lt.s32.totalorder %s4268_s9, %s3719_s29 }
  0x70   : > { %p3716_p12 = pnand %p3714_p8, %p4225_p6  ;;  %p3722_p2 = scmp.lt.s32.totalorder %s3720_s6, %s3713_s8 }
  0x72   : > { %p3717_p3 = pneg %p3716_p12  ;;  %p3723_p0 = por %p3722_p2, %p3721_p9 }
  0x74   : > { %p3724_p1 = pnand %p3723_p0, %p3717_p3 }
  0x76   : > { %3727 = shalt.err (!%p3724_p1)
}
  0x77   : > { %s5221_s24 = smov 8   ;;  %s5222_s27 = smov 128  }
  0x78   : > { %3528 = dma.hbm_to_vmem [thread:$0]  (!%p4199_p4), %s4258_s21, 2048, %s4268_s9, %s4272_s3, %s5222_s27, %s5222_s27, %s5221_s24  }
  0x79   : > { %s5165_s26 = smul.u32 384, %s4190_s17  ;;  %s5223_s7 = sld [smem:[#allocation44_spill]] }
  0x7a   : > { %s3498_s23 = smul.u32 6144, %s3974_s18  ;;  %s5224_s11 = sld [smem:[#allocation48_spill]] }
  0x7b   : > { %s564_s29 = scalar_lea.vmem [#allocation2], %s5165_s26  ;;  %s561_s21 = scalar_lea.sflag [#allocation3], %s4190_s17 }
  0x7c   : > { %s571_s6 = sshll.u32 %s564_s29, 4  ;;  %s4308_s6 = int_to_ptr.vmem [resolvable:$true] %s571_s6 }
  0x7f   : > { %s4304_s10 = scalar_lea.hbm %s5223_s7, %s3498_s23  ;;  %s3733_s0 = scalar_lea.hbm %s5223_s7, 12288 }
  0x80   : > { %s4313_s9 = scalar_lea.hbm %s5224_s11, %s3498_s23  ;;  %s3728_s5 = scalar_lea.hbm %s4304_s10, 6144 }
  0x81   : > { %p3729_p2 = scmp.ne.s32.totalorder %s4304_s10, %s3728_s5  ;;  %p3734_p7 = scmp.lt.u32.totalorder %s4304_s10, %s5223_s7 }
  0x82   : > { %p3735_p10 = scmp.lt.u32.totalorder %s3733_s0, %s3728_s5  ;;  %p3737_p8 = scmp.lt.u32.totalorder %s3728_s5, %s4304_s10 }
  0x83   : > { %p3731_p13 = pnand %p3729_p2, %p4225_p6 }
  0x84   : > { %p3736_p11 = por %p3735_p10, %p3734_p7 }
  0x85   : > { %p3732_p5 = pneg %p3731_p13 }
  0x86   : > { %p3738_p12 = por %p3737_p8, %p3736_p11 }
  0x88   : > { %p3739_p3 = pnand %p3738_p12, %p3732_p5 }
  0x8a   : > { %3742 = shalt.err (!%p3739_p3)
}
  0x8b   : > { %s3743_s12 = scalar_lea.vmem %s4308_s6, 6144  ;;  %s3988_s1 = smov [#allocation2]  }
  0x8c   : > { %p3744_p9 = scmp.ne.s32.totalorder %s4308_s6, %s3743_s12  ;;  %s3748_s23 = sshll.u32 %s3988_s1, 4  ;;  %s3749_s23 = int_to_ptr.vmem [resolvable:$false] %s3748_s23 }
  0x8d   : > { %s3750_s30 = scalar_lea.vmem %s3749_s23, 12288  ;;  %p3751_p2 = scmp.lt.s32.totalorder %s4308_s6, %s3749_s23 }
  0x8e   : > { %p3746_p0 = pnand %p3744_p9, %p4225_p6  ;;  %p3752_p13 = scmp.lt.s32.totalorder %s3750_s30, %s3743_s12 }
  0x90   : > { %p3747_p1 = pneg %p3746_p0  ;;  %p3753_p7 = por %p3752_p13, %p3751_p2 }
  0x92   : > { %p3754_p10 = pnand %p3753_p7, %p3747_p1 }
  0x94   : > { %3757 = shalt.err (!%p3754_p10)
}
  0x95   : > { %s3989_s5 = smov 384   ;;  %s3990_s0 = smov 24  }
  0x96   : > { %3519 = dma.hbm_to_vmem [thread:$0]  (!%p4199_p4), %s4304_s10, 6144, %s4308_s6, %s561_s21, %s3989_s5, %s3989_s5, %s3990_s0  }
  0x97   : > { %s5225_s26 = smul.u32 384, %s4190_s17  ;;  %s2732_s8 = sshll.u32 %s4190_s17, 9 }
  0x98   : > { %s3758_s12 = scalar_lea.hbm %s4313_s9, 6144  ;;  %s3763_s30 = scalar_lea.hbm %s5224_s11, 12288 }
  0x99   : > { %s618_s29 = scalar_lea.vmem [#allocation7], %s5225_s26  ;;  %p3759_p5 = scmp.ne.s32.totalorder %s4313_s9, %s3758_s12 }
  0x9a   : > { %s625_s19 = sshll.u32 %s618_s29, 4  ;;  %p3764_p12 = scmp.lt.u32.totalorder %s4313_s9, %s5224_s11  ;;  %s4345_s19 = int_to_ptr.vmem [resolvable:$true] %s625_s19 }
  0x9b   : > { %p3761_p11 = pnand %p3759_p5, %p4225_p6  ;;  %p3765_p3 = scmp.lt.u32.totalorder %s3763_s30, %s3758_s12 }
  0x9c   : > { %p3767_p0 = scmp.lt.u32.totalorder %s3758_s12, %s4313_s9 }
  0x9d   : > { %p3762_p8 = pneg %p3761_p11  ;;  %p3766_p9 = por %p3765_p3, %p3764_p12 }
  0x9f   : > { %p3768_p1 = por %p3767_p0, %p3766_p9 }
  0xa1   : > { %p3769_p2 = pnand %p3768_p1, %p3762_p8 }
  0xa3   : > { %3772 = shalt.err (!%p3769_p2)
}
  0xa4   : > { %s3773_s10 = scalar_lea.vmem %s4345_s19, 6144  ;;  %s3991_s6 = smov [#allocation7]  }
  0xa5   : > { %p3774_p13 = scmp.ne.s32.totalorder %s4345_s19, %s3773_s10  ;;  %s3778_s21 = sshll.u32 %s3991_s6, 4  ;;  %s3779_s21 = int_to_ptr.vmem [resolvable:$false] %s3778_s21 }
  0xa6   : > { %s3780_s7 = scalar_lea.vmem %s3779_s21, 12288  ;;  %p3781_p5 = scmp.lt.s32.totalorder %s4345_s19, %s3779_s21 }
  0xa7   : > { %p3776_p7 = pnand %p3774_p13, %p4225_p6  ;;  %p3782_p11 = scmp.lt.s32.totalorder %s3780_s7, %s3773_s10 }
  0xa9   : > { %p3777_p10 = pneg %p3776_p7  ;;  %p3783_p12 = por %p3782_p11, %p3781_p5 }
  0xab   : > { %p3784_p3 = pnand %p3783_p12, %p3777_p10 }
  0xad   : > { %3787 = shalt.err (!%p3784_p3)
}
  0xae   : > { %3525 = dma.hbm_to_vmem [thread:$0]  (!%p4199_p4), %s4313_s9, 6144, %s4345_s19, %s4219_s14, %s3989_s5, %s3989_s5, %s3990_s0  }
  0xaf   : > { %s2763_s25 = sshll.u32 %s3974_s18, 13  ;;  %s672_s26 = scalar_lea.vmem [#allocation10], %s2732_s8 }
  0xb0   : > { %s679_s29 = sshll.u32 %s672_s26, 4  ;;  %s5226_s15 = sld [smem:[#allocation52_spill]]  ;;  %s4382_s29 = int_to_ptr.vmem [resolvable:$true] %s679_s29 }
  0xb6   : > { %s4380_s23 = scalar_lea.hbm %s5226_s15, %s2763_s25  ;;  %s3793_s5 = scalar_lea.hbm %s5226_s15, 16384 }
  0xb7   : > { %s3788_s30 = scalar_lea.hbm %s4380_s23, 8192  ;;  %p3794_p1 = scmp.lt.u32.totalorder %s4380_s23, %s5226_s15 }
  0xb8   : > { %p3789_p8 = scmp.ne.s32.totalorder %s4380_s23, %s3788_s30  ;;  %p3795_p2 = scmp.lt.u32.totalorder %s3793_s5, %s3788_s30 }
  0xb9   : > { %p3797_p7 = scmp.lt.u32.totalorder %s3788_s30, %s4380_s23 }
  0xba   : > { %p3791_p9 = pnand %p3789_p8, %p4225_p6  ;;  %p3796_p13 = por %p3795_p2, %p3794_p1 }
  0xbc   : > { %p3792_p0 = pneg %p3791_p9  ;;  %p3798_p10 = por %p3797_p7, %p3796_p13 }
  0xbe   : > { %p3799_p5 = pnand %p3798_p10, %p3792_p0 }
  0xc0   : > { %3802 = shalt.err (!%p3799_p5)
}
  0xc1   : > { %s3803_s10 = scalar_lea.vmem %s4382_s29, 8192  ;;  %s3992_s6 = smov [#allocation10]  }
  0xc2   : > { %p3804_p11 = scmp.ne.s32.totalorder %s4382_s29, %s3803_s10  ;;  %s3808_s21 = sshll.u32 %s3992_s6, 4  ;;  %s3809_s21 = int_to_ptr.vmem [resolvable:$false] %s3808_s21 }
  0xc3   : > { %s3810_s7 = scalar_lea.vmem %s3809_s21, 16384  ;;  %p3811_p8 = scmp.lt.s32.totalorder %s4382_s29, %s3809_s21 }
  0xc4   : > { %p3806_p12 = pnand %p3804_p11, %p4225_p6  ;;  %p3812_p9 = scmp.lt.s32.totalorder %s3810_s7, %s3803_s10 }
  0xc6   : > { %p3807_p3 = pneg %p3806_p12  ;;  %p3813_p1 = por %p3812_p9, %p3811_p8 }
  0xc8   : > { %p3814_p2 = pnand %p3813_p1, %p3807_p3 }
  0xca   : > { %3817 = shalt.err (!%p3814_p2)
}
  0xcb   : > { %s3993_s26 = smov 512   ;;  %s3994_s12 = smov 32  }
  0xcc   : > { %3531 = dma.hbm_to_vmem [thread:$0]  (!%p4199_p4), %s4380_s23, 8192, %s4382_s29, %s4272_s3, %s3993_s26, %s3993_s26, %s3994_s12  }
  0xcd   : > { %s5227_s16 = sld [smem:[#allocation53_spill]]  ;;  %s693_s9 = scalar_lea.vmem [#allocation11], %s2732_s8 }
  0xce   : > { %s700_s5 = sshll.u32 %s693_s9, 4  ;;  %s690_s0 = scalar_lea.sflag [#allocation12], %s4190_s17  ;;  %s4415_s5 = int_to_ptr.vmem [resolvable:$true] %s700_s5 }
  0xd3   : > { %s4411_s14 = scalar_lea.hbm %s5227_s16, %s2763_s25  ;;  %s3823_s25 = scalar_lea.hbm %s5227_s16, 16384 }
  0xd4   : > { %s3818_s19 = scalar_lea.hbm %s4411_s14, 8192  ;;  %p3824_p10 = scmp.lt.u32.totalorder %s4411_s14, %s5227_s16 }
  0xd5   : > { %p3819_p0 = scmp.ne.s32.totalorder %s4411_s14, %s3818_s19  ;;  %p3825_p5 = scmp.lt.u32.totalorder %s3823_s25, %s3818_s19 }
  0xd6   : > { %p3827_p12 = scmp.lt.u32.totalorder %s3818_s19, %s4411_s14 }
  0xd7   : > { %p3821_p13 = pnand %p3819_p0, %p4225_p6  ;;  %p3826_p11 = por %p3825_p5, %p3824_p10 }
  0xd9   : > { %p3822_p7 = pneg %p3821_p13  ;;  %p3828_p3 = por %p3827_p12, %p3826_p11 }
  0xdb   : > { %p3829_p8 = pnand %p3828_p3, %p3822_p7 }
  0xdd   : > { %3832 = shalt.err (!%p3829_p8)
}
  0xde   : > { %s3833_s8 = scalar_lea.vmem %s4415_s5, 8192  ;;  %s3995_s6 = smov [#allocation11]  }
  0xdf   : > { %p3834_p9 = scmp.ne.s32.totalorder %s4415_s5, %s3833_s8  ;;  %s3838_s21 = sshll.u32 %s3995_s6, 4  ;;  %s3839_s21 = int_to_ptr.vmem [resolvable:$false] %s3838_s21 }
  0xe0   : > { %s3840_s7 = scalar_lea.vmem %s3839_s21, 16384  ;;  %p3841_p0 = scmp.lt.s32.totalorder %s4415_s5, %s3839_s21 }
  0xe1   : > { %p3836_p1 = pnand %p3834_p9, %p4225_p6  ;;  %p3842_p13 = scmp.lt.s32.totalorder %s3840_s7, %s3833_s8 }
  0xe3   : > { %p3837_p2 = pneg %p3836_p1  ;;  %p3843_p10 = por %p3842_p13, %p3841_p0 }
  0xe5   : > { %p3844_p5 = pnand %p3843_p10, %p3837_p2 }
  0xe7   : > { %3847 = shalt.err (!%p3844_p5)
}
  0xe8   : > { %3534 = dma.hbm_to_vmem [thread:$0]  (!%p4199_p4), %s4411_s14, 8192, %s4415_s5, %s690_s0, %s5222_s27, %s5222_s27, %s5221_s24  }
  0xe9   : > { %p5228_p6 = scmp.ne.s32.totalorder %s5218_s2, 0 }
  0xeb   : > { %712 = sbr.rel (%p5228_p6) target bundleno = 3575 (0xdf7), region = 88 }
  0xf2   : > { %s714_s4 = sand.u32 1, %s3958_s28   ;;  %p5229_p7 = scmp.ne.s32.totalorder %s5205_s22, 0 }
  0xf3   : > { %s3501_s26 = smul.u32 384, %s714_s4  ;;  %s715_s12 = scalar_lea.sflag [#allocation3], %s714_s4 }
  0xf5   : > { %s4447_s1 = scalar_lea.vmem [#allocation2], %s3501_s26 }
  0xf6   : > { %3921 = dma.done.wait (%p5229_p7), %s715_s12, 6144  }
  0xf7   : > { %3923 = vsyncadd (%p5229_p7), %s715_s12, 4294961152  ;;  %s723_s17 = sand.u32 1, %s4144_s20   ;;  %s2739_s13 = sshll.u32 %s714_s4, 7 }
  0xf8   : > { %s724_s24 = scalar_lea.sflag [#allocation6], %s723_s17  ;;  %s4454_s27 = scalar_lea.vmem [#allocation5], %s2739_s13 }
  0xf9   : > { %3925 = dma.done.wait (%p5229_p7), %s724_s24, 8192  }
  0xfa   : > { %3927 = vsyncadd (%p5229_p7), %s724_s24, 4294959104  ;;  %s4460_s2 = scalar_lea.vmem [#allocation7], %s3501_s26  ;;  %s742_s30 = scalar_lea.sflag [#allocation9], %s723_s17 }
  0xfb   : > { %s4462_s14 = scalar_lea.vmem [#allocation8], %s2739_s13 }
  0xfc   : > { %3929 = dma.done.wait (%p5229_p7), %s742_s30, 10240  }
  0xfd   : > { %3931 = vsyncadd (%p5229_p7), %s742_s30, 4294957056  ;;  %s2741_s20 = sshll.u32 %s714_s4, 9  ;;  %s760_s5 = scalar_lea.sflag [#allocation12], %s714_s4 }
  0xfe   : > { %s4468_s9 = scalar_lea.vmem [#allocation10], %s2741_s20  ;;  %s4470_s0 = scalar_lea.vmem [#allocation11], %s2741_s20 }
  0xff   : > { %5230 = sst [smem:[#allocation35_spill]] %s4468_s9 }
 0x100   : > { %5231 = sst [smem:[#allocation36_spill]] %s4470_s0 }
 0x101   : > { %3933 = dma.done.wait (%p5229_p7), %s760_s5, 8192  }
 0x102   : > { %3935 = vsyncadd (%p5229_p7), %s760_s5, 4294959104  ;;  %s5232_s19 = sld [smem:[#allocation20_spill]]  ;;  %s5233_s3 = sld [smem:[#allocation25_spill]] }
 0x103   : > { %s5234_s29 = sld [smem:[#allocation24_spill]]  ;;  %s5235_s21 = sld [smem:[#allocation37_spill]] }
 0x104   : > { %s5236_s12 = sld [smem:[#allocation38_spill]]  ;;  %s5237_s30 = sld [smem:[#allocation42_spill]] }
 0x105   : > { %s5240_s6 = sld [smem:[#allocation47_spill]]  ;;  %s5242_s13 = sld [smem:[#allocation51_spill]] }
 0x108   : > { %s5168_s25 = sand.u32 1, %s5232_s19   ;;  %p865_p4 = scmp.lt.s32.totalorder %s5233_s3, 1 }
 0x109   : > { %s2743_s23 = sshll.u32 %s5168_s25, 3  ;;  %p873_p11 = scmp.lt.s32.totalorder %s5234_s29, 1 }
 0x10a   : > { %s5281_s3 = smov (!%p865_p4, %s5233_s3), 1  ;;  %s5238_s25 = sld [smem:[#allocation43_spill]] }
 0x10b   : > { %s4483_s10 = scalar_select %p873_p11, %s5234_s29, 1 }
 0x10c   : > { %s2744_s22 = sshll.u32 %s5281_s3, 3  ;;  %s5239_s3 = sld [smem:[#allocation46_spill]] }
 0x10d   : > { %s868_s7 = scalar_lea.vmem %s5235_s21, %s2744_s22  ;;  %s4491_s17 = scalar_lea.vmem %s5236_s12, %s2744_s22 }
 0x10e   : > { %s875_s20 = scalar_lea.vmem %s5237_s30, %s4483_s10  ;;  %s884_s21 = scalar_lea.vmem %s5240_s6, %s4483_s10 }
 0x10f   : > { %s5241_s22 = sld [smem:[#allocation50_spill]]  ;;  %s890_s24 = scalar_lea.vmem %s5242_s13, %s4483_s10 }
 0x110   : > { %s878_s11 = scalar_lea.vmem %s5238_s25, %s4483_s10  ;;  %s4517_s30 = scalar_lea.vmem [#allocation13], %s2743_s23 }
 0x111   : > { %p2746_p12 = scmp.ne.s32.totalorder %s5234_s29, 0 }
 0x112   : > { %s881_s18 = scalar_lea.vmem %s5239_s3, %s4483_s10  ;;  %v895_v0 = vld [vmem:[%s868_s7] sm:$0xff] (!%p2746_p12)  ;;  %s5243_s25 = sld [smem:[#allocation39_spill]] (!%p2746_p12) }
 0x113   : > { %894 = sbr.rel (%p2746_p12) target bundleno = 284 (0x11c), region = 116 }
 0x115   : > { %s887_s26 = scalar_lea.vmem %s5241_s22, %s4483_s10 }
 0x118   : > { %v896_v1 = vld [vmem:[%s5243_s25] sm:$0xff] (!%p2746_p12) }
 0x119   : > { %v897_v2 = vadd.f32 (!%p2746_p12), %v896_v1, %v895_v0 }
 0x11b   : > { %898 = vst [vmem:[%s4517_s30] sm:$0xff] %v897_v2 }
 0x11c PF: > { %v946_v4 = vld [vmem:[%s4447_s1 + $0x8] sm:$0xff]  ;;  %v949_v5 = vld [vmem:[%s4447_s1 + $0x20] sm:$0xff]  ;;  %v3996_v8 = vmov 0.0|0.0   ;;  %v948_v9 = vld [vmem:[%s4447_s1 + $0x18] sm:$0xff]  ;;  %v3997_v60 = vmov 0.0   ;;  %vm3998_vm0 = vmmov 0  }
 0x11d   : > { %v945_v6 = vld [vmem:[%s4447_s1] sm:$0xff]  ;;  %v3161_v7 = vpack.c.bf16 %v949_v5, %v946_v4  ;;  %3193 = vmatprep.subr.bf16.mxu1 %v3996_v8  ;;  %v947_v10 = vld [vmem:[%s4447_s1 + $0x10] sm:$0xff]  ;;  %v950_v11 = vld [vmem:[%s4447_s1 + $0x28] sm:$0xff]  ;;  %1057 = vmatprep.mubr.f32.mxu0 %v3997_v60  ;;  %s5245_s23 = sld [smem:[#allocation40_spill]]  ;;  %s5247_s28 = sld [smem:[#allocation41_spill]]  ;;  %vm1233_vm1 = vcmask 1041408  }
 0x11e   : > { %v3163_v12 = vpack.c.bf16 %v948_v9, %v945_v6  ;;  %v3194_v13 = vpack.c.bf16 %v950_v11, %v947_v10  ;;  %v952_v14 = vld [vmem:[%s4447_s1 + $0x38] sm:$0xff]  ;;  %v955_v15 = vld [vmem:[%s4447_s1 + $0x50] sm:$0xff]  ;;  %v954_v18 = vld [vmem:[%s4447_s1 + $0x48] sm:$0xff]  ;;  %2973 = vmatprep.mubr.msk.f32.mxu1 %vm3998_vm0, %v3997_v60  ;;  %vm1210_vm2 = vcmask 15360   ;;  %s5254_s10 = sld [smem:[#allocation25_spill]]  ;;  %s5257_s22 = sld [smem:[#allocation54_spill]] }
 0x11f   : > { %v951_v16 = vld [vmem:[%s4447_s1 + $0x30] sm:$0xff]  ;;  %3162 = vmatprep.subr.bf16.mxu0 %v3161_v7  ;;  %v3165_v17 = vpack.c.bf16 %v955_v15, %v952_v14  ;;  %v953_v19 = vld [vmem:[%s4447_s1 + $0x40] sm:$0xff]  ;;  %v956_v20 = vld [vmem:[%s4447_s1 + $0x58] sm:$0xff]  ;;  %s3999_s16 = smov [#allocation13]  }
 0x120   : > { %3164 = vmatpush1.bf16.msra.mxu0 %v3163_v12  ;;  %3195 = vmatpush3.bf16.msra.mxu1 %v3194_v13  ;;  %v3167_v21 = vpack.c.bf16 %v954_v18, %v951_v16  ;;  %v3197_v22 = vpack.c.bf16 %v956_v20, %v953_v19  ;;  %v958_v23 = vld [vmem:[%s4447_s1 + $0x68] sm:$0xff]  ;;  %v961_v24 = vld [vmem:[%s4447_s1 + $0x80] sm:$0xff]  ;;  %v960_v27 = vld [vmem:[%s4447_s1 + $0x78] sm:$0xff]  ;;  %s3852_s25 = sshll.u32 %s3999_s16, 4  ;;  %s3853_s25 = int_to_ptr.vmem [resolvable:$false] %s3852_s25 }
 0x121   : > { %v957_v25 = vld [vmem:[%s4447_s1 + $0x60] sm:$0xff]  ;;  %3166 = vmatprep.subr.bf16.mxu0 %v3165_v17  ;;  %3196 = vmatprep.subr.bf16.mxu1 %v3996_v8  ;;  %v3169_v26 = vpack.c.bf16 %v961_v24, %v958_v23  ;;  %v959_v28 = vld [vmem:[%s4447_s1 + $0x70] sm:$0xff]  ;;  %v962_v29 = vld [vmem:[%s4447_s1 + $0x88] sm:$0xff] }
 0x122   : > { %v4525_v3 = vld [vmem:[%s4517_s30] sm:$0xff]  ;;  %v3171_v30 = vpack.c.bf16 %v960_v27, %v957_v25  ;;  %v3200_v31 = vpack.c.bf16 %v962_v29, %v959_v28  ;;  %v964_v36 = vld [vmem:[%s4447_s1 + $0x98] sm:$0xff]  ;;  %v967_v37 = vld [vmem:[%s4447_s1 + $0xb0] sm:$0xff] }
 0x123   : > { %917 = vadd.xlane.f32.xlu0 %v4525_v3  ;;  %v3173_v38 = vpack.c.bf16 %v967_v37, %v964_v36  ;;  %v963_v39 = vld [vmem:[%s4447_s1 + $0x90] sm:$0xff]  ;;  %v966_v40 = vld [vmem:[%s4447_s1 + $0xa8] sm:$0xff]  ;;  %v965_v41 = vld [vmem:[%s4447_s1 + $0xa0] sm:$0xff] }
 0x124   : > { %3168 = vmatpush1.bf16.msra.mxu0 %v3167_v21  ;;  %3198 = vmatpush3.bf16.msra.mxu1 %v3197_v22  ;;  %v3175_v42 = vpack.c.bf16 %v966_v40, %v963_v39  ;;  %v968_v43 = vld [vmem:[%s4447_s1 + $0xb8] sm:$0xff]  ;;  %v970_v45 = vld [vmem:[%s4447_s1 + $0xc8] sm:$0xff]  ;;  %v973_v46 = vld [vmem:[%s4447_s1 + $0xe0] sm:$0xff]  ;;  %s2758_s8 = sshll.u32 %s5254_s10, 7 }
 0x125   : > { %3170 = vmatprep.subr.bf16.mxu0 %v3169_v26  ;;  %3199 = vmatprep.subr.bf16.mxu1 %v3996_v8  ;;  %v3203_v44 = vpack.c.bf16 %v968_v43, %v965_v41  ;;  %v3177_v47 = vpack.c.bf16 %v973_v46, %v970_v45  ;;  %v969_v48 = vld [vmem:[%s4447_s1 + $0xc0] sm:$0xff]  ;;  %v972_v49 = vld [vmem:[%s4447_s1 + $0xd8] sm:$0xff]  ;;  %v971_v50 = vld [vmem:[%s4447_s1 + $0xd0] sm:$0xff] }
 0x126   : > { %v3179_v51 = vpack.c.bf16 %v972_v49, %v969_v48  ;;  %v974_v52 = vld [vmem:[%s4447_s1 + $0xe8] sm:$0xff]  ;;  %v976_v53 = vld [vmem:[%s4447_s1 + $0xf8] sm:$0xff]  ;;  %v979_v54 = vld [vmem:[%s4447_s1 + $0x110] sm:$0xff] }
 0x127   : > { %v3206_v55 = vpack.c.bf16 %v974_v52, %v971_v50  ;;  %v3181_v56 = vpack.c.bf16 %v979_v54, %v976_v53  ;;  %v975_v57 = vld [vmem:[%s4447_s1 + $0xf0] sm:$0xff]  ;;  %v978_v58 = vld [vmem:[%s4447_s1 + $0x108] sm:$0xff]  ;;  %v977_v59 = vld [vmem:[%s4447_s1 + $0x100] sm:$0xff]  ;;  %v1135_v53 = vlaneseq }
 0x128   : > { %3172 = vmatpush1.bf16.msra.mxu0 %v3171_v30  ;;  %3201 = vmatpush3.bf16.msra.mxu1 %v3200_v31  ;;  %v3183_v61 = vpack.c.bf16 %v978_v58, %v975_v57  ;;  %v980_v62 = vld [vmem:[%s4447_s1 + $0x118] sm:$0xff]  ;;  %v982_v63 = vld [vmem:[%s4447_s1 + $0x128] sm:$0xff]  ;;  %v985_v0 = vld [vmem:[%s4447_s1 + $0x140] sm:$0xff] }
 0x129   : > { %3202 = vmatprep.subr.bf16.mxu1 %v3996_v8  ;;  %3174 = vmatprep.subr.bf16.mxu0 %v3173_v38  ;;  %v3209_v1 = vpack.c.bf16 %v980_v62, %v977_v59  ;;  %v3185_v2 = vpack.c.bf16 %v985_v0, %v982_v63  ;;  %v981_v4 = vld [vmem:[%s4447_s1 + $0x120] sm:$0xff]  ;;  %v984_v5 = vld [vmem:[%s4447_s1 + $0x138] sm:$0xff]  ;;  %v983_v6 = vld [vmem:[%s4447_s1 + $0x130] sm:$0xff]  ;;  %v4689_v54 = vshrl.u32 %v1135_v53, 7 }
 0x12a   : > { %v986_v7 = vld [vmem:[%s4447_s1 + $0x148] sm:$0xff]  ;;  %v988_v9 = vld [vmem:[%s4447_s1 + $0x158] sm:$0xff]  ;;  %v991_v10 = vld [vmem:[%s4447_s1 + $0x170] sm:$0xff]  ;;  %v3187_v11 = vpack.c.bf16 %v984_v5, %v981_v4 }
 0x12b   : > { %v3212_v12 = vpack.c.bf16 %v986_v7, %v983_v6  ;;  %v3189_v13 = vpack.c.bf16 %v991_v10, %v988_v9  ;;  %v987_v14 = vld [vmem:[%s4447_s1 + $0x150] sm:$0xff]  ;;  %v990_v15 = vld [vmem:[%s4447_s1 + $0x168] sm:$0xff]  ;;  %v989_v16 = vld [vmem:[%s4447_s1 + $0x160] sm:$0xff] }
 0x12c   : > { %3176 = vmatpush1.bf16.msra.mxu0 %v3175_v42  ;;  %3204 = vmatpush3.bf16.msra.mxu1 %v3203_v44  ;;  %v992_v17 = vld [vmem:[%s4447_s1 + $0x178] sm:$0xff]  ;;  %v3191_v18 = vpack.c.bf16 %v990_v15, %v987_v14  ;;  %v2747_v24 = vld [vmem:[%s875_s20] ss:$0 sm:$0xff]  ;;  %v900_v27 = vld [vmem:[%s5245_s23 + $0x8] sm:$0xff]  ;;  %s2452_s20 = sshll.u32 %s4517_s30, 4  ;;  %s5061_s20 = int_to_ptr.vmem [resolvable:$true] %s2452_s20 }
 0x12d   : > { %3205 = vmatprep.subr.bf16.mxu1 %v3996_v8  ;;  %3178 = vmatprep.subr.bf16.mxu0 %v3177_v47  ;;  %v3215_v19 = vpack.c.bf16 %v992_v17, %v989_v16  ;;  %v899_v26 = vld [vmem:[%s5245_s23] sm:$0xff]  ;;  %v904_v36 = vld [vmem:[%s5245_s23 + $0x28] sm:$0xff]  ;;  %v905_v38 = vld [vmem:[%s5245_s23 + $0x30] sm:$0xff]  ;;  %s3848_s15 = scalar_lea.vmem %s5061_s20, 128  ;;  %p3855_p2 = scmp.lt.s32.totalorder %s5061_s20, %s3853_s25 }
 0x12e   : > { %v2748_v28 = vld [vmem:[%s878_s11] ss:$0 sm:$0xff]  ;;  %v4611_v30 = vpack.c.bf16 %v900_v27, %v899_v26  ;;  %v906_v39 = vld [vmem:[%s5245_s23 + $0x38] sm:$0xff]  ;;  %v908_v42 = vld [vmem:[%s5245_s23 + $0x48] sm:$0xff]  ;;  %s5059_s11 = scalar_lea.hbm %s5257_s22, %s2758_s8  ;;  %p3849_p3 = scmp.ne.s32.totalorder %s5061_s20, %s3848_s15 }
 0x12f   : > { %v4644_v40 = vpack.c.bf16 %v906_v39, %v905_v38  ;;  %v907_v41 = vld [vmem:[%s5245_s23 + $0x40] sm:$0xff]  ;;  %v909_v44 = vld [vmem:[%s5245_s23 + $0x50] sm:$0xff]  ;;  %v910_v45 = vld [vmem:[%s5245_s23 + $0x58] sm:$0xff] }
 0x130   : > { %3180 = vmatpush1.bf16.msra.mxu0 %v3179_v51  ;;  %3207 = vmatpush3.bf16.msra.mxu1 %v3206_v55  ;;  %v4654_v43 = vpack.c.bf16 %v908_v42, %v907_v41  ;;  %v4664_v46 = vpack.c.bf16 %v910_v45, %v909_v44  ;;  %v911_v47 = vld [vmem:[%s5245_s23 + $0x60] sm:$0xff]  ;;  %v912_v48 = vld [vmem:[%s5245_s23 + $0x68] sm:$0xff]  ;;  %v913_v50 = vld [vmem:[%s5245_s23 + $0x70] sm:$0xff]  ;;  %v1137_v55 = vsub.s32 7, %v4689_v54 }
 0x131   : > { %3182 = vmatprep.subr.bf16.mxu0 %v3181_v56  ;;  %3208 = vmatprep.subr.bf16.mxu1 %v3996_v8  ;;  %v4675_v49 = vpack.c.bf16 %v912_v48, %v911_v47  ;;  %v914_v51 = vld [vmem:[%s5245_s23 + $0x78] sm:$0xff]  ;;  %v4699_v0 = vld [vmem:[%s5247_s28] sm:$0x3]  ;;  %v1316_v4 = vld [vmem:[%s4454_s27 + $0x10] sm:$0xff]  ;;  %s3854_s28 = scalar_lea.vmem %s3853_s25, 256 }
 0x132   : > { %v4685_v52 = vpack.c.bf16 %v914_v51, %v913_v50  ;;  %v1317_v6 = vld [vmem:[%s4454_s27 + $0x18] sm:$0xff]  ;;  %v1318_v9 = vld [vmem:[%s4454_s27 + $0x20] sm:$0xff]  ;;  %v1319_v10 = vld [vmem:[%s4454_s27 + $0x28] sm:$0xff]  ;;  %p3856_p0 = scmp.lt.s32.totalorder %s3854_s28, %s3848_s15 }
 0x133   : > { %v3245_v7 = vpack.c.bf16 %v1317_v6, %v1316_v4  ;;  %v1322_v39 = vld [vmem:[%s4454_s27 + $0x40] sm:$0xff]  ;;  %v1323_v41 = vld [vmem:[%s4454_s27 + $0x48] sm:$0xff]  ;;  %v1324_v44 = vld [vmem:[%s4454_s27 + $0x50] sm:$0xff]  ;;  %v4735_v6 = vsub.s32 0, %v4689_v54 }
 0x134   : > { %3184 = vmatpush1.bf16.msra.mxu0 %v3183_v61  ;;  %3210 = vmatpush3.bf16.msra.mxu1 %v3209_v1  ;;  %v1314_v1 = vld [vmem:[%s4454_s27] sm:$0xff]  ;;  %v3254_v42 = vpack.c.bf16 %v1323_v41, %v1322_v39  ;;  %v1325_v45 = vld [vmem:[%s4454_s27 + $0x58] sm:$0xff]  ;;  %v1327_v50 = vld [vmem:[%s4454_s27 + $0x68] sm:$0xff]  ;;  %p3857_p13 = por %p3856_p0, %p3855_p2 }
 0x135   : > { %3186 = vmatprep.subr.bf16.mxu0 %v3185_v2  ;;  %3211 = vmatprep.subr.bf16.mxu1 %v3996_v8  ;;  %v1315_v2 = vld [vmem:[%s4454_s27 + $0x8] sm:$0xff]  ;;  %v3257_v47 = vpack.c.bf16 %v1325_v45, %v1324_v44  ;;  %v1326_v48 = vld [vmem:[%s4454_s27 + $0x60] sm:$0xff]  ;;  %v1328_v53 = vld [vmem:[%s4454_s27 + $0x70] sm:$0xff] }
 0x136   : > { %v3242_v5 = vpack.c.bf16 %v1315_v2, %v1314_v1  ;;  %v3260_v51 = vpack.c.bf16 %v1327_v50, %v1326_v48  ;;  %v1437_v54 = vld [vmem:[%s4460_s2 + $0x28] sm:$0xff]  ;;  %v1450_v45 = vld [vmem:[%s4460_s2 + $0x90] sm:$0xff]  ;;  %v1452_v50 = vld [vmem:[%s4460_s2 + $0xa0] sm:$0xff] }
 0x137   : > { %v1445_v41 = vld [vmem:[%s4460_s2 + $0x68] sm:$0xff] }
 0x138   : > { %3188 = vmatpush1.bf16.msra.mxu0 %v3187_v11  ;;  %3213 = vmatpush3.bf16.msra.mxu1 %v3212_v12  ;;  %v3248_v11 = vpack.c.bf16 %v1319_v10, %v1318_v9  ;;  %v1320_v12 = vld [vmem:[%s4454_s27 + $0x30] sm:$0xff] }
 0x139   : > { %3190 = vmatprep.subr.bf16.mxu0 %v3189_v13  ;;  %3214 = vmatprep.subr.bf16.mxu1 %v3996_v8  ;;  %v1321_v13 = vld [vmem:[%s4454_s27 + $0x38] sm:$0xff] }
 0x13a   : > { %v3251_v14 = vpack.c.bf16 %v1321_v13, %v1320_v12  ;;  %v1435_v12 = vld [vmem:[%s4460_s2 + $0x18] sm:$0xff]  ;;  %v1434_v13 = vld [vmem:[%s4460_s2 + $0x10] sm:$0xff] }
 0x13c   : > { %3192 = vmatpush1.bf16.msra.mxu0 %v3191_v18  ;;  %3216 = vmatpush3.bf16.msra.mxu1 %v3215_v19 }
 0x13d   : > { %3217 = vmatprep.subr.bf16.mxu0 %v3996_v8  ;;  %3241 = vmatprep.subr.bf16.mxu1 %v3996_v8 }
 0x1b0   : > { %v918_v32 = vpop.xlane.xlu0 %917 }
 0x1b1   : > { %v920_v33 = vmul.f32 0.0078125, %v918_v32  ;;  %v901_v32 = vld [vmem:[%s5245_s23 + $0x10] sm:$0xff] }
 0x1b3   : > { %v4551_v34 = vsub.f32 %v4525_v3, %v920_v33  ;;  %v902_v33 = vld [vmem:[%s5245_s23 + $0x18] sm:$0xff] }
 0x1b5   : > { %v922_v35 = vmul.f32 %v4551_v34, %v4551_v34 }
 0x1b7   : > { %923 = vadd.xlane.f32.xlu0 %v922_v35  ;;  %v903_v35 = vld [vmem:[%s5245_s23 + $0x20] sm:$0xff] }
 0x1b8   : > { %v4634_v37 = vpack.c.bf16 %v904_v36, %v903_v35 }
 0x244   : > { %v924_v20 = vpop.xlane.xlu0 %923 }
 0x245   : > { %v925_v21 = vmul.f32 0.0078125, %v924_v20 }
 0x247   : > { %v926_v22 = vadd.f32 1e-05, %v925_v21 }
 0x249   : > { %3638 = vrsqrt.f32 %v926_v22 }
 0x253   : > { %v3639_v23 = vpop.eup %3638 }
 0x254   : > { %v928_v25 = vmul.f32 %v3639_v23, %v4551_v34  ;;  %v4620_v34 = vpack.c.bf16 %v902_v33, %v901_v32 }
 0x256   : > { %v936_v29 = vmul.f32 %v2747_v24, %v928_v25 }
 0x258   : > { %v944_v31 = vadd.f32 %v2748_v28, %v936_v29 }
 0x25a   : > { %1058 = vmatmul.mubr.f32.vlgmr.msra.gmra.mrb[0].mxu0 %v944_v31  ;;  %2974 = vmatmul.mubr.f32.vlgmr.msra.gmra.mrb[0].mxu1 %v944_v31 }
 0x25b   : > { %3219 = vmatpush3.bf16.msra.mxu0 %v4611_v30  ;;  %3008 = vmatprep.mubr.msk.f32.mxu0 %vm3998_vm0, %v3997_v60 }
 0x25c   : > { %3220 = vmatprep.subr.bf16.mxu0 %v3996_v8  ;;  %3048 = vmatprep.mubr.msk.f32.mxu1 %vm3998_vm0, %v3997_v60 }
 0x25d   : > { %3243 = vmatpush3.bf16.msra.mxu1 %v3242_v5 }
 0x25e   : > { %3244 = vmatprep.subr.bf16.mxu1 %v3996_v8 }
 0x25f   : > { %3222 = vmatpush3.bf16.msra.mxu0 %v4620_v34 }
 0x260   : > { %3223 = vmatprep.subr.bf16.mxu0 %v3996_v8 }
 0x261   : > { %3246 = vmatpush3.bf16.msra.mxu1 %v3245_v7 }
 0x262   : > { %3247 = vmatprep.subr.bf16.mxu1 %v3996_v8 }
 0x263   : > { %3225 = vmatpush3.bf16.msra.mxu0 %v4634_v37 }
 0x264   : > { %3226 = vmatprep.subr.bf16.mxu0 %v3996_v8 }
 0x265   : > { %3249 = vmatpush3.bf16.msra.mxu1 %v3248_v11  ;;  %v1432_v11 = vld [vmem:[%s4460_s2] sm:$0xff] }
 0x266   : > { %3250 = vmatprep.subr.bf16.mxu1 %v3996_v8 }
 0x267   : > { %3228 = vmatpush3.bf16.msra.mxu0 %v4644_v40 }
 0x268   : > { %3229 = vmatprep.subr.bf16.mxu0 %v3996_v8 }
 0x269   : > { %3252 = vmatpush3.bf16.msra.mxu1 %v3251_v14  ;;  %v3266_v14 = vpack.c.bf16 %v1435_v12, %v1432_v11  ;;  %v1464_v11 = vld [vmem:[%s4460_s2 + $0x100] sm:$0xff]  ;;  %v1467_v12 = vld [vmem:[%s4460_s2 + $0x118] sm:$0xff] }
 0x26a   : > { %3253 = vmatprep.subr.bf16.mxu1 %v3996_v8 }
 0x26b   : > { %3231 = vmatpush3.bf16.msra.mxu0 %v4654_v43 }
 0x26c   : > { %3232 = vmatprep.subr.bf16.mxu0 %v3996_v8 }
 0x26d   : > { %3255 = vmatpush3.bf16.msra.mxu1 %v3254_v42  ;;  %v1448_v42 = vld [vmem:[%s4460_s2 + $0x80] sm:$0xff] }
 0x26e   : > { %3256 = vmatprep.subr.bf16.mxu1 %v3996_v8  ;;  %v3299_v44 = vpack.c.bf16 %v1448_v42, %v1445_v41 }
 0x26f   : > { %3234 = vmatpush3.bf16.msra.mxu0 %v4664_v46 }
 0x270   : > { %3235 = vmatprep.subr.bf16.mxu0 %v3996_v8 }
 0x271   : > { %3258 = vmatpush3.bf16.msra.mxu1 %v3257_v47  ;;  %v1453_v47 = vld [vmem:[%s4460_s2 + $0xa8] sm:$0xff] }
 0x272   : > { %3259 = vmatprep.subr.bf16.mxu1 %v3996_v8  ;;  %v3275_v48 = vpack.c.bf16 %v1453_v47, %v1450_v45  ;;  %v2751_v45 = vld [vmem:[%s881_s18] ss:$0 sm:$0xff]  ;;  %s5250_s18 = sld [smem:[#allocation35_spill]] }
 0x273   : > { %3237 = vmatpush3.bf16.msra.mxu0 %v4675_v49 }
 0x274   : > { %3238 = vmatprep.subr.bf16.mxu0 %v3996_v8 }
 0x275   : > { %3261 = vmatpush3.bf16.msra.mxu1 %v3260_v51  ;;  %v1455_v51 = vld [vmem:[%s4460_s2 + $0xb8] sm:$0xff] }
 0x276   : > { %3262 = vmatprep.subr.bf16.mxu1 %v3996_v8 }
 0x277   : > { %3240 = vmatpush3.bf16.msra.mxu0 %v4685_v52 }
 0x278   : > { %3011 = vmatprep.subr.mxu0 %v3997_v60 }
 0x32d   : > { %v1059_v56 = vpop.f32.mrb[0].mxu0  ;;  %v4692_v57 = vpop.f32.mrb[0].mxu1 }
 0x32e   : > { %v1134_v58 = vmul.f32 0.125, %v1059_v56  ;;  %v1061_v59 = vpop.f32.mrb[1].mxu0  ;;  %v2975_v61 = vpop.f32.mrb[1].mxu1 }
 0x330   : > { %v1138_v62 = vrot.slane %v1134_v58, %v1137_v55  ;;  %v1329_v55 = vld [vmem:[%s4454_s27 + $0x78] sm:$0xff] }
 0x331   : > { %v3263_v56 = vpack.c.bf16 %v1329_v55, %v1328_v53  ;;  %v3301_v53 = vpack.c.bf16 %v1455_v51, %v1452_v50  ;;  %v1451_v55 = vld [vmem:[%s4460_s2 + $0x98] sm:$0xff] }
 0x332   : > { %v1139_v63 = vmul.f32 %v1138_v62, %v1061_v59 }
 0x333   : > { %3264 = vmatpush3.bf16.msra.mxu1 %v3263_v56  ;;  %v1454_v56 = vld [vmem:[%s4460_s2 + $0xb0] sm:$0xff] }
 0x334   : > { %3009 = vmatmul.mubr.f32.vlgmr.msra.gmra.mrb[2].mxu0 %v1139_v63 }
 0x335   : > { %3013 = vmatprep.mubr.msk.f32.mxu0 %vm3998_vm0, %v3997_v60  ;;  %3012 = vmatpush3.msk.msra.mxu0 %vm1233_vm1, %v4699_v0 }
 0x336   : > { %3265 = vmatprep.subr.bf16.mxu0 %v3996_v8 }
 0x407   : > { %v1206_v15 = vpop.f32.mrb[2].mxu0 }
 0x408   : > { %v1211_v16 = vsel %vm1210_vm2, %v1206_v15, -inf  ;;  %v3010_v17 = vpop.f32.mrb[3].mxu0 }
 0x409   : > { %v1212_v18 = vrot.slane %v1211_v16, 4  ;;  %v3289_v17 = vpack.c.bf16 %v1437_v54, %v1434_v13  ;;  %v1463_v54 = vld [vmem:[%s4460_s2 + $0xf8] sm:$0xff] }
 0x40b   : > { %v1213_v19 = vmax.f32 %v1211_v16, %v1212_v18  ;;  %v1436_v16 = vld [vmem:[%s4460_s2 + $0x20] sm:$0xff]  ;;  %3290 = vmatprep.subr.bf16.mxu1 %v3289_v17  ;;  %v1471_v17 = vld [vmem:[%s4460_s2 + $0x138] sm:$0xff] }
 0x40d   : > { %v1214_v20 = vrot.slane %v1213_v19, 2 }
 0x40f   : > { %v1215_v21 = vmax.f32 %v1213_v19, %v1214_v20  ;;  %v1438_v19 = vld [vmem:[%s4460_s2 + $0x30] sm:$0xff]  ;;  %v1441_v20 = vld [vmem:[%s4460_s2 + $0x48] sm:$0xff] }
 0x411   : > { %v1216_v22 = vrot.slane %v1215_v21, 1 }
 0x413   : > { %v1217_v23 = vmax.f32 %v1215_v21, %v1216_v22  ;;  %v1440_v21 = vld [vmem:[%s4460_s2 + $0x40] sm:$0xff]  ;;  %v1443_v22 = vld [vmem:[%s4460_s2 + $0x58] sm:$0xff] }
 0x415   : > { %v1218_v24 = vsub.f32 %v1206_v15, %v1217_v23  ;;  %v1433_v15 = vld [vmem:[%s4460_s2 + $0x8] sm:$0xff]  ;;  %v1439_v23 = vld [vmem:[%s4460_s2 + $0x38] sm:$0xff] }
 0x416   : > { %v3291_v18 = vpack.c.bf16 %v1436_v16, %v1433_v15  ;;  %v1466_v15 = vld [vmem:[%s4460_s2 + $0x110] sm:$0xff]  ;;  %v1468_v16 = vld [vmem:[%s4460_s2 + $0x120] sm:$0xff] }
 0x417   : > { %v1219_v25 = vmul.f32 1.442695, %v1218_v24  ;;  %v1442_v24 = vld [vmem:[%s4460_s2 + $0x50] sm:$0xff] }
 0x419   : > { %3640 = vpow2.f32 %v1219_v25  ;;  %v3293_v25 = vpack.c.bf16 %v1443_v22, %v1440_v21  ;;  %v3284_v21 = vpack.c.bf16 %v1471_v17, %v1468_v16  ;;  %v1469_v22 = vld [vmem:[%s4460_s2 + $0x128] sm:$0xff]  ;;  %v1802_v17 = vld [vmem:[%s4462_s14 + $0x10] sm:$0xff] }
 0x423   : > { %v3641_v26 = vpop.eup %3640 }
 0x424   : > { %v1221_v27 = vsel %vm1210_vm2, %v3641_v26, 0.0 }
 0x425   : > { %v1222_v28 = vrot.slane %v1221_v27, 4 }
 0x427   : > { %v1223_v29 = vadd.f32 %v1222_v28, %v1221_v27 }
 0x429   : > { %v1224_v31 = vrot.slane %v1223_v29, 2 }
 0x42b   : > { %v1225_v32 = vadd.f32 %v1224_v31, %v1223_v29 }
 0x42d   : > { %v1226_v33 = vrot.slane %v1225_v32, 1 }
 0x42f   : > { %v1227_v35 = vadd.f32 %v1226_v33, %v1225_v32  ;;  %v1444_v32 = vld [vmem:[%s4460_s2 + $0x60] sm:$0xff]  ;;  %v1447_v33 = vld [vmem:[%s4460_s2 + $0x78] sm:$0xff] }
 0x431   : > { %3642 = vrcp.f32 %v1227_v35  ;;  %v3272_v35 = vpack.c.bf16 %v1447_v33, %v1444_v32  ;;  %v1475_v33 = vld [vmem:[%s4460_s2 + $0x158] sm:$0xff] }
 0x43b   : > { %v3643_v36 = vpop.eup %3642 }
 0x43c   : > { %v1229_v38 = vmul.f32 %v3643_v36, %v3641_v26  ;;  %v3295_v26 = vpack.c.bf16 %v1442_v24, %v1439_v23  ;;  %v1446_v36 = vld [vmem:[%s4460_s2 + $0x70] sm:$0xff]  ;;  %v1472_v23 = vld [vmem:[%s4460_s2 + $0x140] sm:$0xff] }
 0x43d   : > { %v1474_v24 = vld [vmem:[%s4460_s2 + $0x150] sm:$0xff] }
 0x43e   : > { %3014 = vmatmul.mubr.msk.f32.vlgmr.msra.gmra.mrb[4].mxu0 %vm1210_vm2, %v1229_v38  ;;  %v1449_v38 = vld [vmem:[%s4460_s2 + $0x88] sm:$0xff] }
 0x43f   : > { %3083 = vmatprep.mubr.msk.f32.mxu0 %vm3998_vm0, %v3997_v60  ;;  %3267 = vmatpush3.bf16.msra.mxu0 %v3266_v14  ;;  %v3297_v39 = vpack.c.bf16 %v1449_v38, %v1446_v36  ;;  %v3309_v14 = vpack.c.bf16 %v1467_v12, %v1464_v11  ;;  %v1553_v38 = vld [vmem:[%s4491_s17] sm:$0xff] }
 0x440   : > { %3268 = vmatprep.subr.bf16.mxu0 %v3996_v8 }
 0x511   : > { %v1303_v58 = vpop.f32.mrb[4].mxu0 }
 0x512   : > { %v1307_v59 = vmul.f32 %v1303_v58, %v4692_v57  ;;  %v3015_v61 = vpop.f32.mrb[5].mxu0  ;;  %v1456_v58 = vld [vmem:[%s4460_s2 + $0xc0] sm:$0xff] }
 0x513   : > { %v1459_v61 = vld [vmem:[%s4460_s2 + $0xd8] sm:$0xff] }
 0x514   : > { %v1308_v62 = vrot.slane %v1307_v59, 4 }
 0x516   : > { %v1309_v63 = vadd.f32 %v1308_v62, %v1307_v59  ;;  %v3303_v59 = vpack.c.bf16 %v1454_v56, %v1451_v55  ;;  %v1458_v62 = vld [vmem:[%s4460_s2 + $0xd0] sm:$0xff] }
 0x518   : > { %v1310_v1 = vrot.slane %v1309_v63, 2 }
 0x51a   : > { %v1311_v2 = vadd.f32 %v1310_v1, %v1309_v63  ;;  %v1461_v63 = vld [vmem:[%s4460_s2 + $0xe8] sm:$0xff]  ;;  %v3278_v1 = vpack.c.bf16 %v1459_v61, %v1456_v58 }
 0x51c   : > { %v1312_v4 = vrot.slane %v1311_v2, 1 }
 0x51e   : > { %v1313_v5 = vadd.f32 %v1312_v4, %v1311_v2  ;;  %v3305_v2 = vpack.c.bf16 %v1461_v63, %v1458_v62  ;;  %v1457_v4 = vld [vmem:[%s4460_s2 + $0xc8] sm:$0xff] }
 0x520   : > { %3049 = vmatmul.mubr.f32.vlgmr.msra.gmra.mrb[2].mxu1 %v1313_v5  ;;  %v1460_v5 = vld [vmem:[%s4460_s2 + $0xe0] sm:$0xff] }
 0x521   : > { %1618 = vmatprep.mubr.f32.mxu1 %v3997_v60  ;;  %3292 = vmatpush1.bf16.msra.mxu1 %v3291_v18  ;;  %v1470_v18 = vld [vmem:[%s4460_s2 + $0x130] sm:$0xff] }
 0x522   : > { %3294 = vmatprep.subr.bf16.mxu1 %v3293_v25  ;;  %v1477_v25 = vld [vmem:[%s4460_s2 + $0x168] sm:$0xff] }
 0x525   : > { %3296 = vmatpush1.bf16.msra.mxu1 %v3295_v26  ;;  %v1476_v26 = vld [vmem:[%s4460_s2 + $0x160] sm:$0xff] }
 0x526   : > { %3298 = vmatprep.subr.bf16.mxu1 %v3297_v39 }
 0x529   : > { %3300 = vmatpush1.bf16.msra.mxu1 %v3299_v44 }
 0x52a   : > { %3302 = vmatprep.subr.bf16.mxu1 %v3301_v53 }
 0x52d   : > { %3304 = vmatpush1.bf16.msra.mxu1 %v3303_v59 }
 0x52e   : > { %3306 = vmatprep.subr.bf16.mxu1 %v3305_v2 }
 0x5f3   : > { %v1396_v57 = vpop.f32.mrb[2].mxu1 }
 0x5f4   : > { %v1403_v7 = vrot.slane %v1396_v57, %v4735_v6  ;;  %v3050_v9 = vpop.f32.mrb[3].mxu1  ;;  %v1462_v57 = vld [vmem:[%s4460_s2 + $0xf0] sm:$0xff] }
 0x5f5   : > { %v1465_v9 = vld [vmem:[%s4460_s2 + $0x108] sm:$0xff] }
 0x5f6   : > { %v4739_v10 = vadd.f32 %v1403_v7, %v4525_v3  ;;  %v3269_v3 = vpack.c.bf16 %v1441_v20, %v1438_v19  ;;  %v3307_v7 = vpack.c.bf16 %v1460_v5, %v1457_v4  ;;  %v3281_v13 = vpack.c.bf16 %v1465_v9, %v1462_v57  ;;  %v1473_v19 = vld [vmem:[%s4460_s2 + $0x148] sm:$0xff] }
 0x5f7   : > { %v3311_v20 = vpack.c.bf16 %v1466_v15, %v1463_v54 }
 0x5f8   : > { %1405 = vadd.xlane.f32.xlu1 %v4739_v10  ;;  %3270 = vmatpush3.bf16.msra.mxu0 %v3269_v3  ;;  %v3313_v3 = vpack.c.bf16 %v1473_v19, %v1470_v18  ;;  %v1803_v18 = vld [vmem:[%s4462_s14 + $0x18] sm:$0xff] }
 0x5f9   : > { %3271 = vmatprep.subr.bf16.mxu0 %v3996_v8  ;;  %3308 = vmatpush1.bf16.msra.mxu1 %v3307_v7  ;;  %v3349_v19 = vpack.c.bf16 %v1803_v18, %v1802_v17  ;;  %v1938_v18 = vld [vmem:[%s5250_s18 + $0xa0] sm:$0xff] }
 0x5fa   : > { %3310 = vmatprep.subr.bf16.mxu1 %v3309_v14  ;;  %v1801_v14 = vld [vmem:[%s4462_s14 + $0x8] sm:$0xff] }
 0x5fc   : > { %3273 = vmatpush3.bf16.msra.mxu0 %v3272_v35  ;;  %v1478_v35 = vld [vmem:[%s4460_s2 + $0x170] sm:$0xff] }
 0x5fd   : > { %3274 = vmatprep.subr.bf16.mxu0 %v3996_v8  ;;  %3312 = vmatpush1.bf16.msra.mxu1 %v3311_v20  ;;  %v3319_v36 = vpack.c.bf16 %v1478_v35, %v1475_v33  ;;  %v1804_v20 = vld [vmem:[%s4462_s14 + $0x20] sm:$0xff]  ;;  %v1813_v35 = vld [vmem:[%s4462_s14 + $0x68] sm:$0xff] }
 0x5fe   : > { %3314 = vmatprep.subr.bf16.mxu1 %v3313_v3  ;;  %v1812_v33 = vld [vmem:[%s4462_s14 + $0x60] sm:$0xff] }
 0x600   : > { %3276 = vmatpush3.bf16.msra.mxu0 %v3275_v48 }
 0x601   : > { %3277 = vmatprep.subr.bf16.mxu0 %v3996_v8 }
 0x604   : > { %3279 = vmatpush3.bf16.msra.mxu0 %v3278_v1 }
 0x605   : > { %3280 = vmatprep.subr.bf16.mxu0 %v3996_v8 }
 0x608   : > { %3282 = vmatpush3.bf16.msra.mxu0 %v3281_v13  ;;  %v1800_v13 = vld [vmem:[%s4462_s14] sm:$0xff] }
 0x609   : > { %3283 = vmatprep.subr.bf16.mxu0 %v3996_v8  ;;  %v3346_v15 = vpack.c.bf16 %v1801_v14, %v1800_v13 }
 0x60c   : > { %3285 = vmatpush3.bf16.msra.mxu0 %v3284_v21  ;;  %v1805_v21 = vld [vmem:[%s4462_s14 + $0x28] sm:$0xff] }
 0x60d   : > { %3286 = vmatprep.subr.bf16.mxu0 %v3996_v8  ;;  %v3352_v3 = vpack.c.bf16 %v1805_v21, %v1804_v20  ;;  %v1940_v20 = vld [vmem:[%s5250_s18 + $0xb0] sm:$0xff] }
 0x685   : > { %v1406_v27 = vpop.xlane.xlu1 %1405 }
 0x686   : > { %v1407_v28 = vmul.f32 0.0078125, %v1406_v27  ;;  %v1479_v27 = vld [vmem:[%s4460_s2 + $0x178] sm:$0xff] }
 0x687   : > { %v3317_v32 = vpack.c.bf16 %v1479_v27, %v1476_v26  ;;  %v1809_v26 = vld [vmem:[%s4462_s14 + $0x48] sm:$0xff] }
 0x688   : > { %v4757_v29 = vsub.f32 %v4739_v10, %v1407_v28  ;;  %v3315_v28 = vpack.c.bf16 %v1472_v23, %v1469_v22  ;;  %v1806_v22 = vld [vmem:[%s4462_s14 + $0x30] sm:$0xff]  ;;  %v1807_v23 = vld [vmem:[%s4462_s14 + $0x38] sm:$0xff] }
 0x68a   : > { %v1409_v31 = vmul.f32 %v4757_v29, %v4757_v29  ;;  %3316 = vmatpush1.bf16.msra.mxu1 %v3315_v28  ;;  %v1810_v28 = vld [vmem:[%s4462_s14 + $0x50] sm:$0xff] }
 0x68b   : > { %3318 = vmatprep.subr.bf16.mxu1 %v3317_v32 }
 0x68c   : > { %1410 = vadd.xlane.f32.xlu1 %v1409_v31  ;;  %v3287_v31 = vpack.c.bf16 %v1477_v25, %v1474_v24  ;;  %v3355_v24 = vpack.c.bf16 %v1807_v23, %v1806_v22  ;;  %v1808_v25 = vld [vmem:[%s4462_s14 + $0x40] sm:$0xff] }
 0x68d   : > { %v3358_v27 = vpack.c.bf16 %v1809_v26, %v1808_v25  ;;  %v1943_v26 = vld [vmem:[%s5250_s18 + $0xc8] sm:$0xff] }
 0x68e   : > { %3288 = vmatpush3.bf16.msra.mxu0 %v3287_v31  ;;  %3320 = vmatpush1.bf16.msra.mxu1 %v3319_v36  ;;  %v1811_v31 = vld [vmem:[%s4462_s14 + $0x58] sm:$0xff]  ;;  %v3364_v36 = vpack.c.bf16 %v1813_v35, %v1812_v33  ;;  %v1942_v33 = vld [vmem:[%s5250_s18 + $0xc0] sm:$0xff] }
 0x68f   : > { %3321 = vmatprep.subr.bf16.mxu0 %v3996_v8  ;;  %3121 = vmatprep.subr.mxu1 %v3997_v60  ;;  %v3361_v32 = vpack.c.bf16 %v1811_v31, %v1810_v28  ;;  %v1945_v28 = vld [vmem:[%s5250_s18 + $0xd8] sm:$0xff]  ;;  %v1946_v35 = vld [vmem:[%s5250_s18 + $0xe0] sm:$0xff] }
 0x691   : > { %1619 = vmatmul.mubr.f32.vlgmr.msra.gmra.mrb[4].mxu1 %v1553_v38  ;;  %v1814_v38 = vld [vmem:[%s4462_s14 + $0x70] sm:$0xff] }
 0x692   : > { %3122 = vmatpush3.msk.msra.mxu1 %vm1233_vm1, %v4699_v0  ;;  %3123 = vmatprep.mubr.msk.f32.mxu1 %vm3998_vm0, %v3997_v60  ;;  %v2752_v0 = vld [vmem:[%s884_s21] ss:$0 sm:$0xff] }
 0x693   : > { %3345 = vmatprep.subr.bf16.mxu1 %v3996_v8 }
 0x719   : > { %v1411_v39 = vpop.xlane.xlu1 %1410 }
 0x71a   : > { %v1412_v41 = vmul.f32 0.0078125, %v1411_v39  ;;  %v1815_v39 = vld [vmem:[%s4462_s14 + $0x78] sm:$0xff]  ;;  %s5251_s14 = sld [smem:[#allocation36_spill]] }
 0x71c   : > { %v1413_v42 = vadd.f32 1e-05, %v1412_v41  ;;  %v3367_v41 = vpack.c.bf16 %v1815_v39, %v1814_v38  ;;  %v3383_v38 = vpack.c.bf16 %v1946_v35, %v1942_v33  ;;  %v1944_v39 = vld [vmem:[%s5250_s18 + $0xd0] sm:$0xff] }
 0x71e   : > { %3644 = vrsqrt.f32 %v1413_v42 }
 0x728   : > { %v3645_v44 = vpop.eup %3644 }
 0x729   : > { %v1415_v47 = vmul.f32 %v3645_v44, %v4757_v29 }
 0x72b   : > { %v1423_v48 = vmul.f32 %v2751_v45, %v1415_v47 }
 0x72d   : > { %v1431_v50 = vadd.f32 %v2752_v0, %v1423_v48 }
 0x72f   : > { %v1481_v51 = vrot.slane %v1431_v50, 7 }
 0x731   : > { %3084 = vmatmul.mubr.f32.vlgmr.msra.gmra.mrb[6].mxu0 %v1481_v51 }
 0x732   : > { %3323 = vmatpush3.bf16.msra.mxu0 %v4611_v30  ;;  %3118 = vmatprep.mubr.msk.f32.mxu0 %vm3998_vm0, %v3997_v60 }
 0x733   : > { %3324 = vmatprep.subr.bf16.mxu0 %v3996_v8 }
 0x736   : > { %3326 = vmatpush3.bf16.msra.mxu0 %v4620_v34 }
 0x737   : > { %3327 = vmatprep.subr.bf16.mxu0 %v3996_v8 }
 0x73a   : > { %3329 = vmatpush3.bf16.msra.mxu0 %v4634_v37 }
 0x73b   : > { %3330 = vmatprep.subr.bf16.mxu0 %v3996_v8 }
 0x73e   : > { %3332 = vmatpush3.bf16.msra.mxu0 %v4644_v40 }
 0x73f   : > { %3333 = vmatprep.subr.bf16.mxu0 %v3996_v8 }
 0x742   : > { %3335 = vmatpush3.bf16.msra.mxu0 %v4654_v43 }
 0x743   : > { %3336 = vmatprep.subr.bf16.mxu0 %v3996_v8 }
 0x746   : > { %3338 = vmatpush3.bf16.msra.mxu0 %v4664_v46 }
 0x747   : > { %3339 = vmatprep.subr.bf16.mxu0 %v3996_v8 }
 0x74a   : > { %3341 = vmatpush3.bf16.msra.mxu0 %v4675_v49 }
 0x74b   : > { %3342 = vmatprep.subr.bf16.mxu0 %v3996_v8 }
 0x74e   : > { %3344 = vmatpush3.bf16.msra.mxu0 %v4685_v52 }
 0x764   : > { %v1620_v30 = vpop.f32.mrb[4].mxu1 }
 0x765   : > { %v4838_v34 = vpop.f32.mrb[5].mxu1 }
 0x804   : > { %v1549_v37 = vpop.f32.mrb[6].mxu0 }
 0x805   : > { %v1625_v40 = vmul.f32 0.125, %v1549_v37  ;;  %v3085_v29 = vpop.f32.mrb[7].mxu0 }
 0x806   : > { %v1919_v29 = vld [vmem:[%s5250_s18 + $0x8] sm:$0xff] }
 0x807   : > { %v1629_v43 = vrot.slane %v1625_v40, %v4735_v6 }
 0x809   : > { %v1630_v53 = vmul.f32 %v1629_v43, %v1620_v30  ;;  %v1923_v43 = vld [vmem:[%s5250_s18 + $0x28] sm:$0xff] }
 0x80b   : > { %3119 = vmatmul.mubr.f32.vlgmr.msra.gmra.mrb[8].mxu0 %v1630_v53  ;;  %v1921_v53 = vld [vmem:[%s5250_s18 + $0x18] sm:$0xff] }
 0x80c   : > { %2046 = vmatprep.mubr.f32.mxu0 %v3997_v60 }
 0x8de   : > { %v1697_v46 = vpop.f32.mrb[8].mxu0 }
 0x8df   : > { %v1701_v55 = vsel %vm1210_vm2, %v1697_v46, -inf  ;;  %v3120_v49 = vpop.f32.mrb[9].mxu0 }
 0x8e0   : > { %v1702_v56 = vrot.slane %v1701_v55, 4  ;;  %v1922_v49 = vld [vmem:[%s5250_s18 + $0x20] sm:$0xff] }
 0x8e2   : > { %v1703_v58 = vmax.f32 %v1701_v55, %v1702_v56  ;;  %v1925_v55 = vld [vmem:[%s5250_s18 + $0x38] sm:$0xff] }
 0x8e3   : > { %v3401_v56 = vpack.c.bf16 %v1925_v55, %v1921_v53  ;;  %v1963_v53 = vld [vmem:[%s5250_s18 + $0x168] sm:$0xff]  ;;  %v1965_v55 = vld [vmem:[%s5250_s18 + $0x178] sm:$0xff] }
 0x8e4   : > { %v1704_v59 = vrot.slane %v1703_v58, 2 }
 0x8e6   : > { %v1705_v52 = vmax.f32 %v1703_v58, %v1704_v59  ;;  %v1920_v58 = vld [vmem:[%s5250_s18 + $0x10] sm:$0xff]  ;;  %v1927_v59 = vld [vmem:[%s5250_s18 + $0x48] sm:$0xff] }
 0x8e8   : > { %v1706_v61 = vrot.slane %v1705_v52, 1 }
 0x8ea   : > { %v1707_v62 = vmax.f32 %v1705_v52, %v1706_v61  ;;  %v1931_v61 = vld [vmem:[%s5250_s18 + $0x68] sm:$0xff] }
 0x8ec   : > { %v1708_v63 = vsub.f32 %v1697_v46, %v1707_v62  ;;  %v3369_v46 = vpack.c.bf16 %v1923_v43, %v1919_v29  ;;  %v1929_v62 = vld [vmem:[%s5250_s18 + $0x58] sm:$0xff]  ;;  %v1959_v29 = vld [vmem:[%s5250_s18 + $0x148] sm:$0xff] }
 0x8ee   : > { %v1709_v1 = vmul.f32 1.442695, %v1708_v63  ;;  %3370 = vmatprep.subr.bf16.mxu0 %v3369_v46  ;;  %v1933_v63 = vld [vmem:[%s5250_s18 + $0x78] sm:$0xff] }
 0x8ef   : > { %v1961_v46 = vld [vmem:[%s5250_s18 + $0x158] sm:$0xff] }
 0x8f0   : > { %3646 = vpow2.f32 %v1709_v1  ;;  %v3373_v1 = vpack.c.bf16 %v1931_v61, %v1927_v59  ;;  %v1964_v59 = vld [vmem:[%s5250_s18 + $0x170] sm:$0xff]  ;;  %v1971_v61 = vld [vmem:[%s5250_s18 + $0x1a8] sm:$0xff] }
 0x8fa   : > { %v3647_v2 = vpop.eup %3646 }
 0x8fb   : > { %v1711_v4 = vsel %vm1210_vm2, %v3647_v2, 0.0 }
 0x8fc   : > { %v1712_v5 = vrot.slane %v1711_v4, 4 }
 0x8fe   : > { %v1713_v57 = vadd.f32 %v1712_v5, %v1711_v4  ;;  %v1926_v4 = vld [vmem:[%s5250_s18 + $0x40] sm:$0xff] }
 0x8ff   : > { %v1930_v5 = vld [vmem:[%s5250_s18 + $0x60] sm:$0xff] }
 0x900   : > { %v1714_v7 = vrot.slane %v1713_v57, 2 }
 0x902   : > { %v1715_v9 = vadd.f32 %v1714_v7, %v1713_v57  ;;  %v1928_v57 = vld [vmem:[%s5250_s18 + $0x50] sm:$0xff]  ;;  %v3375_v7 = vpack.c.bf16 %v1930_v5, %v1926_v4  ;;  %v1966_v4 = vld [vmem:[%s5250_s18 + $0x180] sm:$0xff] }
 0x904   : > { %v1716_v11 = vrot.slane %v1715_v9, 1 }
 0x906   : > { %v1717_v12 = vadd.f32 %v1716_v11, %v1715_v9  ;;  %v1932_v9 = vld [vmem:[%s5250_s18 + $0x70] sm:$0xff]  ;;  %v1935_v11 = vld [vmem:[%s5250_s18 + $0x88] sm:$0xff] }
 0x907   : > { %v3407_v13 = vpack.c.bf16 %v1932_v9, %v1928_v57  ;;  %v1970_v57 = vld [vmem:[%s5250_s18 + $0x1a0] sm:$0xff]  ;;  %v1972_v9 = vld [vmem:[%s5250_s18 + $0x1b0] sm:$0xff] }
 0x908   : > { %3648 = vrcp.f32 %v1717_v12  ;;  %v1939_v12 = vld [vmem:[%s5250_s18 + $0xa8] sm:$0xff] }
 0x909   : > { %v3377_v14 = vpack.c.bf16 %v1939_v12, %v1935_v11  ;;  %v3395_v11 = vpack.c.bf16 %v1970_v57, %v1966_v4  ;;  %v1975_v12 = vld [vmem:[%s5250_s18 + $0x1c8] sm:$0xff]  ;;  %v2255_v57 = vld [vmem:[%s5251_s14 + $0xb8] sm:$0xff] }
 0x912   : > { %v3649_v54 = vpop.eup %3648 }
 0x913   : > { %v1719_v16 = vmul.f32 %v3649_v54, %v3647_v2  ;;  %v3405_v2 = vpack.c.bf16 %v1933_v63, %v1929_v62  ;;  %v1937_v54 = vld [vmem:[%s5250_s18 + $0x98] sm:$0xff] }
 0x915   : > { %3124 = vmatmul.mubr.msk.f32.vlgmr.msra.gmra.mrb[6].mxu1 %vm1210_vm2, %v1719_v16  ;;  %v1934_v16 = vld [vmem:[%s5250_s18 + $0x80] sm:$0xff] }
 0x916   : > { %3347 = vmatpush3.bf16.msra.mxu1 %v3346_v15  ;;  %3158 = vmatprep.mubr.msk.f32.mxu1 %vm3998_vm0, %v3997_v60  ;;  %v1941_v15 = vld [vmem:[%s5250_s18 + $0xb8] sm:$0xff]  ;;  %v3379_v21 = vpack.c.bf16 %v1938_v18, %v1934_v16  ;;  %v1978_v18 = vld [vmem:[%s5250_s18 + $0x1e0] sm:$0xff] }
 0x917   : > { %3348 = vmatprep.subr.bf16.mxu1 %v3996_v8  ;;  %v3409_v17 = vpack.c.bf16 %v1941_v15, %v1937_v54  ;;  %v1981_v16 = vld [vmem:[%s5250_s18 + $0x1f8] sm:$0xff] }
 0x91a   : > { %3350 = vmatpush3.bf16.msra.mxu1 %v3349_v19  ;;  %v1936_v19 = vld [vmem:[%s5250_s18 + $0x90] sm:$0xff] }
 0x91b   : > { %3351 = vmatprep.subr.bf16.mxu1 %v3996_v8 }
 0x91e   : > { %3353 = vmatpush3.bf16.msra.mxu1 %v3352_v3  ;;  %v3411_v3 = vpack.c.bf16 %v1940_v20, %v1936_v19  ;;  %v1976_v20 = vld [vmem:[%s5250_s18 + $0x1d0] sm:$0xff] }
 0x91f   : > { %3354 = vmatprep.subr.bf16.mxu1 %v3996_v8 }
 0x922   : > { %3356 = vmatpush3.bf16.msra.mxu1 %v3355_v24 }
 0x923   : > { %3357 = vmatprep.subr.bf16.mxu1 %v3996_v8 }
 0x926   : > { %3359 = vmatpush3.bf16.msra.mxu1 %v3358_v27  ;;  %v1947_v27 = vld [vmem:[%s5250_s18 + $0xe8] sm:$0xff] }
 0x927   : > { %3360 = vmatprep.subr.bf16.mxu1 %v3996_v8  ;;  %v3381_v31 = vpack.c.bf16 %v1947_v27, %v1943_v26 }
 0x92a   : > { %3362 = vmatpush3.bf16.msra.mxu1 %v3361_v32  ;;  %v1949_v32 = vld [vmem:[%s5250_s18 + $0xf8] sm:$0xff] }
 0x92b   : > { %3363 = vmatprep.subr.bf16.mxu1 %v3996_v8 }
 0x92e   : > { %3365 = vmatpush3.bf16.msra.mxu1 %v3364_v36  ;;  %v3413_v36 = vpack.c.bf16 %v1949_v32, %v1945_v28  ;;  %v2755_v28 = vld [vmem:[%s887_s26] ss:$0 sm:$0xff]  ;;  %s5255_s26 = sld [smem:[#allocation20_spill]] }
 0x92f   : > { %3366 = vmatprep.subr.bf16.mxu1 %v3996_v8  ;;  %v2756_v32 = vld [vmem:[%s890_s24] ss:$0 sm:$0xff]  ;;  %s5256_s24 = sld [smem:[#allocation33_spill]] }
 0x932   : > { %3368 = vmatpush3.bf16.msra.mxu1 %v3367_v41  ;;  %v1948_v41 = vld [vmem:[%s5250_s18 + $0xf0] sm:$0xff] }
 0x933   : > { %3402 = vmatprep.subr.bf16.mxu1 %v3401_v56  ;;  %v1958_v56 = vld [vmem:[%s5250_s18 + $0x140] sm:$0xff] }
 0x934   : > { %s5258_s12 = sand.u32 1, %s5255_s26  }
 0x935   : > { %s2439_s13 = scalar_lea.sflag [#allocation4], %s5258_s12  ;;  %p5259_p8 = scmp.ne.s32.totalorder %s5256_s24, 0 }
 0x937   : > { %p3850_p9 = pnand %p3849_p3, %p5259_p8 }
 0x939   : > { %p3851_p1 = pneg %p3850_p9 }
 0x93b   : > { %p3858_p10 = pnand %p3857_p13, %p3851_p1 }
 0x9e8   : > { %v1789_v42 = vpop.f32.mrb[6].mxu1 }
 0x9e9   : > { %v1793_v44 = vmul.f32 %v1789_v42, %v4838_v34  ;;  %v3125_v45 = vpop.f32.mrb[7].mxu1  ;;  %v3415_v42 = vpack.c.bf16 %v1948_v41, %v1944_v39  ;;  %v2280_v39 = vld [vmem:[%s5251_s14 + $0x180] sm:$0xff] }
 0x9ea   : > { %v1955_v45 = vld [vmem:[%s5250_s18 + $0x128] sm:$0xff] }
 0x9eb   : > { %v1794_v47 = vrot.slane %v1793_v44, 4 }
 0x9ed   : > { %v1795_v0 = vadd.f32 %v1794_v47, %v1793_v44  ;;  %v1951_v44 = vld [vmem:[%s5250_s18 + $0x108] sm:$0xff]  ;;  %v1953_v47 = vld [vmem:[%s5250_s18 + $0x118] sm:$0xff] }
 0x9ef   : > { %v1796_v48 = vrot.slane %v1795_v0, 2 }
 0x9f1   : > { %v1797_v50 = vadd.f32 %v1796_v48, %v1795_v0  ;;  %v3385_v0 = vpack.c.bf16 %v1955_v45, %v1951_v44  ;;  %v1957_v48 = vld [vmem:[%s5250_s18 + $0x138] sm:$0xff]  ;;  %v2233_v44 = vld [vmem:[%s5251_s14 + $0x8] sm:$0xff] }
 0x9f3   : > { %v1798_v51 = vrot.slane %v1797_v50, 1 }
 0x9f5   : > { %v1799_v8 = vadd.f32 %v1798_v51, %v1797_v50  ;;  %v1950_v50 = vld [vmem:[%s5250_s18 + $0x100] sm:$0xff] }
 0x9f6   : > { %v1954_v51 = vld [vmem:[%s5250_s18 + $0x120] sm:$0xff] }
 0x9f7   : > { %3159 = vmatmul.mubr.f32.vlgmr.msra.gmra.mrb[8].mxu1 %v1799_v8  ;;  %v3417_v8 = vpack.c.bf16 %v1957_v48, %v1953_v47  ;;  %v2265_v48 = vld [vmem:[%s5251_s14 + $0x108] sm:$0xff] }
 0x9f8   : > { %2117 = vmatprep.mubr.f32.mxu1 %v3997_v60  ;;  %v1918_v60 = vld [vmem:[%s5250_s18] sm:$0xff] }
 0xaca   : > { %v1882_v30 = vpop.f32.mrb[8].mxu1 }
 0xacb   : > { %v1889_v34 = vrot.slane %v1882_v30, %v4735_v6  ;;  %v3160_v37 = vpop.f32.mrb[9].mxu1  ;;  %v3371_v6 = vpack.c.bf16 %v1922_v49, %v1918_v60  ;;  %v3387_v30 = vpack.c.bf16 %v1954_v51, %v1950_v50  ;;  %v3389_v60 = vpack.c.bf16 %v1963_v53, %v1959_v29  ;;  %v2250_v51 = vld [vmem:[%s5251_s14 + $0x90] sm:$0xff] }
 0xacc   : > { %v1956_v37 = vld [vmem:[%s5250_s18 + $0x130] sm:$0xff]  ;;  %v3421_v49 = vpack.c.bf16 %v1965_v55, %v1961_v46 }
 0xacd   : > { %v4874_v40 = vadd.f32 %v1889_v34, %v4739_v10  ;;  %v1924_v10 = vld [vmem:[%s5250_s18 + $0x30] sm:$0xff]  ;;  %3372 = vmatpush1.bf16.msra.mxu0 %v3371_v6  ;;  %v1962_v6 = vld [vmem:[%s5250_s18 + $0x160] sm:$0xff] }
 0xace   : > { %v3403_v52 = vpack.c.bf16 %v1924_v10, %v1920_v58  ;;  %3374 = vmatprep.subr.bf16.mxu0 %v3373_v1  ;;  %v1952_v34 = vld [vmem:[%s5250_s18 + $0x110] sm:$0xff]  ;;  %v3391_v10 = vpack.c.bf16 %v1962_v6, %v1958_v56  ;;  %v1969_v1 = vld [vmem:[%s5250_s18 + $0x198] sm:$0xff]  ;;  %v2252_v56 = vld [vmem:[%s5251_s14 + $0xa0] sm:$0xff] }
 0xacf   : > { %1891 = vadd.xlane.f32.xlu0 %v4874_v40  ;;  %v3419_v43 = vpack.c.bf16 %v1956_v37, %v1952_v34  ;;  %v1960_v58 = vld [vmem:[%s5250_s18 + $0x150] sm:$0xff]  ;;  %v2283_v37 = vld [vmem:[%s5251_s14 + $0x198] sm:$0xff]  ;;  %v2253_v6 = vld [vmem:[%s5251_s14 + $0xa8] sm:$0xff] }
 0xad0   : > { %3404 = vmatpush1.bf16.msra.mxu1 %v3403_v52  ;;  %v1967_v52 = vld [vmem:[%s5250_s18 + $0x188] sm:$0xff]  ;;  %v3423_v62 = vpack.c.bf16 %v1964_v59, %v1960_v58  ;;  %v2234_v29 = vld [vmem:[%s5251_s14 + $0x10] sm:$0xff]  ;;  %v2284_v58 = vld [vmem:[%s5251_s14 + $0x1a0] sm:$0xff] }
 0xad1   : > { %3406 = vmatprep.subr.bf16.mxu1 %v3405_v2  ;;  %3376 = vmatpush1.bf16.msra.mxu0 %v3375_v7  ;;  %v3393_v63 = vpack.c.bf16 %v1971_v61, %v1967_v52  ;;  %v1973_v2 = vld [vmem:[%s5250_s18 + $0x1b8] sm:$0xff]  ;;  %v1968_v7 = vld [vmem:[%s5250_s18 + $0x190] sm:$0xff]  ;;  %v2285_v59 = vld [vmem:[%s5251_s14 + $0x1a8] sm:$0xff] }
 0xad2   : > { %3378 = vmatprep.subr.bf16.mxu0 %v3377_v14  ;;  %v3425_v5 = vpack.c.bf16 %v1973_v2, %v1969_v1  ;;  %v1977_v14 = vld [vmem:[%s5250_s18 + $0x1d8] sm:$0xff]  ;;  %v3427_v54 = vpack.c.bf16 %v1972_v9, %v1968_v7  ;;  %v2266_v55 = vld [vmem:[%s5251_s14 + $0x110] sm:$0xff]  ;;  %v2236_v52 = vld [vmem:[%s5251_s14 + $0x20] sm:$0xff] }
 0xad3   : > { %v3429_v19 = vpack.c.bf16 %v1981_v16, %v1977_v14  ;;  %v2237_v61 = vld [vmem:[%s5251_s14 + $0x28] sm:$0xff]  ;;  %v2268_v1 = vld [vmem:[%s5251_s14 + $0x120] sm:$0xff]  ;;  %v2286_v7 = vld [vmem:[%s5251_s14 + $0x1b0] sm:$0xff] }
 0xad4   : > { %3408 = vmatpush1.bf16.msra.mxu1 %v3407_v13  ;;  %v1979_v13 = vld [vmem:[%s5250_s18 + $0x1e8] sm:$0xff]  ;;  %v2271_v16 = vld [vmem:[%s5251_s14 + $0x138] sm:$0xff] }
 0xad5   : > { %3410 = vmatprep.subr.bf16.mxu1 %v3409_v17  ;;  %3380 = vmatpush1.bf16.msra.mxu0 %v3379_v21  ;;  %v3397_v15 = vpack.c.bf16 %v1979_v13, %v1975_v12  ;;  %v1974_v17 = vld [vmem:[%s5250_s18 + $0x1c0] sm:$0xff]  ;;  %v1980_v21 = vld [vmem:[%s5250_s18 + $0x1f0] sm:$0xff]  ;;  %v2269_v2 = vld [vmem:[%s5251_s14 + $0x128] sm:$0xff] }
 0xad6   : > { %3382 = vmatprep.subr.bf16.mxu0 %v3381_v31  ;;  %v3475_v4 = vpack.c.bf16 %v2269_v2, %v2268_v1  ;;  %v2238_v12 = vld [vmem:[%s5251_s14 + $0x30] sm:$0xff]  ;;  %v2239_v13 = vld [vmem:[%s5251_s14 + $0x38] sm:$0xff] }
 0xad8   : > { %3412 = vmatpush1.bf16.msra.mxu1 %v3411_v3  ;;  %v3399_v3 = vpack.c.bf16 %v1978_v18, %v1974_v17  ;;  %v2256_v18 = vld [vmem:[%s5251_s14 + $0xc0] sm:$0xff] }
 0xad9   : > { %3414 = vmatprep.subr.bf16.mxu1 %v3413_v36  ;;  %3384 = vmatpush1.bf16.msra.mxu0 %v3383_v38  ;;  %v2248_v36 = vld [vmem:[%s5251_s14 + $0x80] sm:$0xff]  ;;  %v2249_v38 = vld [vmem:[%s5251_s14 + $0x88] sm:$0xff] }
 0xada   : > { %3386 = vmatprep.subr.bf16.mxu0 %v3385_v0  ;;  %v3433_v41 = vpack.c.bf16 %v2249_v38, %v2248_v36  ;;  %v2264_v0 = vld [vmem:[%s5251_s14 + $0x100] sm:$0xff]  ;;  %v2291_v38 = vld [vmem:[%s5251_s14 + $0x1d8] sm:$0xff] }
 0xadb   : > { %v3467_v50 = vpack.c.bf16 %v2265_v48, %v2264_v0  ;;  %v2260_v0 = vld [vmem:[%s5251_s14 + $0xe0] sm:$0xff]  ;;  %v2261_v48 = vld [vmem:[%s5251_s14 + $0xe8] sm:$0xff] }
 0xadc   : > { %3416 = vmatpush1.bf16.msra.mxu1 %v3415_v42  ;;  %v2281_v42 = vld [vmem:[%s5251_s14 + $0x188] sm:$0xff] }
 0xadd   : > { %3418 = vmatprep.subr.bf16.mxu1 %v3417_v8  ;;  %3388 = vmatpush1.bf16.msra.mxu0 %v3387_v30  ;;  %v3465_v45 = vpack.c.bf16 %v2281_v42, %v2280_v39  ;;  %v2251_v8 = vld [vmem:[%s5251_s14 + $0x98] sm:$0xff]  ;;  %v2282_v30 = vld [vmem:[%s5251_s14 + $0x190] sm:$0xff] }
 0xade   : > { %3390 = vmatprep.subr.bf16.mxu0 %v3389_v60  ;;  %v3437_v34 = vpack.c.bf16 %v2251_v8, %v2250_v51  ;;  %v3469_v53 = vpack.c.bf16 %v2283_v37, %v2282_v30  ;;  %v2267_v60 = vld [vmem:[%s5251_s14 + $0x118] sm:$0xff]  ;;  %v2242_v39 = vld [vmem:[%s5251_s14 + $0x50] sm:$0xff]  ;;  %v3457_v51 = vpack.c.bf16 %v2261_v48, %v2260_v0  ;;  %v2293_v8 = vld [vmem:[%s5251_s14 + $0x1e8] sm:$0xff] }
 0xadf   : > { %v2244_v30 = vld [vmem:[%s5251_s14 + $0x60] sm:$0xff] }
 0xae0   : > { %3420 = vmatpush1.bf16.msra.mxu1 %v3419_v43  ;;  %v2235_v43 = vld [vmem:[%s5251_s14 + $0x18] sm:$0xff] }
 0xae1   : > { %3422 = vmatprep.subr.bf16.mxu1 %v3421_v49  ;;  %3392 = vmatpush1.bf16.msra.mxu0 %v3391_v10  ;;  %v3439_v46 = vpack.c.bf16 %v2235_v43, %v2234_v29  ;;  %v3471_v49 = vpack.c.bf16 %v2267_v60, %v2266_v55  ;;  %v3441_v10 = vpack.c.bf16 %v2253_v6, %v2252_v56  ;;  %v2276_v43 = vld [vmem:[%s5251_s14 + $0x160] sm:$0xff]  ;;  %v2262_v55 = vld [vmem:[%s5251_s14 + $0xf0] sm:$0xff]  ;;  %v2263_v60 = vld [vmem:[%s5251_s14 + $0xf8] sm:$0xff] }
 0xae2   : > { %3394 = vmatprep.subr.bf16.mxu0 %v3393_v63  ;;  %v3443_v63 = vpack.c.bf16 %v2237_v61, %v2236_v52  ;;  %v3461_v56 = vpack.c.bf16 %v2263_v60, %v2262_v55  ;;  %v2295_v6 = vld [vmem:[%s5251_s14 + $0x1f8] sm:$0xff]  ;;  %v2278_v61 = vld [vmem:[%s5251_s14 + $0x170] sm:$0xff] }
 0xae4   : > { %3424 = vmatpush1.bf16.msra.mxu1 %v3423_v62  ;;  %v3473_v62 = vpack.c.bf16 %v2285_v59, %v2284_v58  ;;  %v2246_v58 = vld [vmem:[%s5251_s14 + $0x70] sm:$0xff] }
 0xae5   : > { %3426 = vmatprep.subr.bf16.mxu1 %v3425_v5  ;;  %3396 = vmatpush1.bf16.msra.mxu0 %v3395_v11  ;;  %v2254_v5 = vld [vmem:[%s5251_s14 + $0xb0] sm:$0xff]  ;;  %v2287_v11 = vld [vmem:[%s5251_s14 + $0x1b8] sm:$0xff] }
 0xae6   : > { %3398 = vmatprep.subr.bf16.mxu0 %v3397_v15  ;;  %v3445_v9 = vpack.c.bf16 %v2255_v57, %v2254_v5  ;;  %v3477_v14 = vpack.c.bf16 %v2287_v11, %v2286_v7  ;;  %v2270_v15 = vld [vmem:[%s5251_s14 + $0x130] sm:$0xff] }
 0xae7   : > { %v3479_v17 = vpack.c.bf16 %v2271_v16, %v2270_v15 }
 0xae8   : > { %3428 = vmatpush1.bf16.msra.mxu1 %v3427_v54  ;;  %v3447_v54 = vpack.c.bf16 %v2239_v13, %v2238_v12 }
 0xae9   : > { %3430 = vmatprep.subr.bf16.mxu1 %v3429_v19  ;;  %3400 = vmatpush1.bf16.msra.mxu0 %v3399_v3  ;;  %v2257_v19 = vld [vmem:[%s5251_s14 + $0xc8] sm:$0xff] }
 0xaea   : > { %3434 = vmatprep.subr.bf16.mxu0 %v3433_v41  ;;  %v2289_v3 = vld [vmem:[%s5251_s14 + $0x1c8] sm:$0xff]  ;;  %v2243_v41 = vld [vmem:[%s5251_s14 + $0x58] sm:$0xff] }
 0xb5c   : > { %v1892_v22 = vpop.xlane.xlu0 %1891 }
 0xb5d   : > { %v1893_v23 = vmul.f32 0.0078125, %v1892_v22  ;;  %v3431_v22 = vpack.c.bf16 %v1980_v21, %v1976_v20  ;;  %v2288_v20 = vld [vmem:[%s5251_s14 + $0x1c0] sm:$0xff]  ;;  %v3449_v21 = vpack.c.bf16 %v2257_v19, %v2256_v18 }
 0xb5f   : > { %v4902_v24 = vsub.f32 %v4874_v40, %v1893_v23  ;;  %3432 = vmatpush1.bf16.msra.mxu1 %v3431_v22  ;;  %v2240_v22 = vld [vmem:[%s5251_s14 + $0x40] sm:$0xff] }
 0xb60   : > { %3466 = vmatprep.subr.bf16.mxu1 %v3465_v45  ;;  %v2275_v45 = vld [vmem:[%s5251_s14 + $0x158] sm:$0xff] }
 0xb61   : > { %v1895_v25 = vmul.f32 %v4902_v24, %v4902_v24 }
 0xb63   : > { %1896 = vadd.xlane.f32.xlu1 %v1895_v25 }
 0xbf0   : > { %v1897_v23 = vpop.xlane.xlu1 %1896 }
 0xbf1   : > { %v1898_v25 = vmul.f32 0.0078125, %v1897_v23  ;;  %v2241_v23 = vld [vmem:[%s5251_s14 + $0x48] sm:$0xff] }
 0xbf3   : > { %v1899_v26 = vadd.f32 1e-05, %v1898_v25  ;;  %v3481_v25 = vpack.c.bf16 %v2289_v3, %v2288_v20 }
 0xbf5   : > { %3650 = vrsqrt.f32 %v1899_v26  ;;  %v3451_v26 = vpack.c.bf16 %v2241_v23, %v2240_v22 }
 0xbff   : > { %v3651_v27 = vpop.eup %3650 }
 0xc00   : > { %v1901_v31 = vmul.f32 %v3651_v27, %v4902_v24  ;;  %v2232_v24 = vld [vmem:[%s5251_s14] sm:$0xff] }
 0xc01   : > { %v3435_v47 = vpack.c.bf16 %v2233_v44, %v2232_v24  ;;  %v2272_v27 = vld [vmem:[%s5251_s14 + $0x140] sm:$0xff]  ;;  %v3455_v24 = vpack.c.bf16 %v2243_v41, %v2242_v39  ;;  %v2274_v44 = vld [vmem:[%s5251_s14 + $0x150] sm:$0xff] }
 0xc02   : > { %v1909_v33 = vmul.f32 %v2755_v28, %v1901_v31  ;;  %v2273_v28 = vld [vmem:[%s5251_s14 + $0x148] sm:$0xff] }
 0xc03   : > { %v3483_v31 = vpack.c.bf16 %v2273_v28, %v2272_v27 }
 0xc04   : > { %v1917_v35 = vadd.f32 %v2756_v32, %v1909_v33  ;;  %v2258_v32 = vld [vmem:[%s5251_s14 + $0xd0] sm:$0xff]  ;;  %v2259_v33 = vld [vmem:[%s5251_s14 + $0xd8] sm:$0xff] }
 0xc05   : > { %v3453_v36 = vpack.c.bf16 %v2259_v33, %v2258_v32 }
 0xc06   : > { %2047 = vmatmul.mubr.f32.vlgmr.msra.gmra.mrb[10].mxu0 %v1917_v35  ;;  %2118 = vmatmul.mubr.f32.vlgmr.msra.gmra.mrb[10].mxu1 %v1917_v35  ;;  %v2290_v35 = vld [vmem:[%s5251_s14 + $0x1d0] sm:$0xff] }
 0xc07   : > { %3436 = vmatpush3.bf16.msra.mxu0 %v3435_v47  ;;  %3468 = vmatpush3.bf16.msra.mxu1 %v3467_v50  ;;  %v3485_v42 = vpack.c.bf16 %v2291_v38, %v2290_v35  ;;  %v3487_v47 = vpack.c.bf16 %v2275_v45, %v2274_v44  ;;  %v2292_v50 = vld [vmem:[%s5251_s14 + $0x1e0] sm:$0xff] }
 0xc08   : > { %3438 = vmatprep.subr.bf16.mxu0 %v3437_v34  ;;  %3470 = vmatprep.subr.bf16.mxu1 %v3469_v53  ;;  %v2245_v34 = vld [vmem:[%s5251_s14 + $0x68] sm:$0xff]  ;;  %v3489_v37 = vpack.c.bf16 %v2293_v8, %v2292_v50 }
 0xc09   : > { %v3459_v29 = vpack.c.bf16 %v2245_v34, %v2244_v30  ;;  %v2277_v53 = vld [vmem:[%s5251_s14 + $0x168] sm:$0xff] }
 0xc0b   : > { %3440 = vmatpush3.bf16.msra.mxu0 %v3439_v46  ;;  %3472 = vmatpush3.bf16.msra.mxu1 %v3471_v49  ;;  %v3491_v46 = vpack.c.bf16 %v2277_v53, %v2276_v43  ;;  %v2294_v49 = vld [vmem:[%s5251_s14 + $0x1f0] sm:$0xff] }
 0xc0c   : > { %3442 = vmatprep.subr.bf16.mxu0 %v3441_v10  ;;  %3474 = vmatprep.subr.bf16.mxu1 %v3473_v62  ;;  %v2247_v10 = vld [vmem:[%s5251_s14 + $0x78] sm:$0xff]  ;;  %v3493_v59 = vpack.c.bf16 %v2295_v6, %v2294_v49 }
 0xc0d   : > { %v3463_v52 = vpack.c.bf16 %v2247_v10, %v2246_v58  ;;  %v2279_v62 = vld [vmem:[%s5251_s14 + $0x178] sm:$0xff] }
 0xc0f   : > { %3444 = vmatpush3.bf16.msra.mxu0 %v3443_v63  ;;  %3476 = vmatpush3.bf16.msra.mxu1 %v3475_v4  ;;  %v3495_v63 = vpack.c.bf16 %v2279_v62, %v2278_v61 }
 0xc10   : > { %3446 = vmatprep.subr.bf16.mxu0 %v3445_v9  ;;  %3478 = vmatprep.subr.bf16.mxu1 %v3477_v14 }
 0xc13   : > { %3448 = vmatpush3.bf16.msra.mxu0 %v3447_v54  ;;  %3480 = vmatpush3.bf16.msra.mxu1 %v3479_v17 }
 0xc14   : > { %3450 = vmatprep.subr.bf16.mxu0 %v3449_v21  ;;  %3482 = vmatprep.subr.bf16.mxu1 %v3481_v25 }
 0xc17   : > { %3452 = vmatpush3.bf16.msra.mxu0 %v3451_v26  ;;  %3484 = vmatpush3.bf16.msra.mxu1 %v3483_v31 }
 0xc18   : > { %3454 = vmatprep.subr.bf16.mxu0 %v3453_v36  ;;  %3486 = vmatprep.subr.bf16.mxu1 %v3485_v42 }
 0xc1b   : > { %3456 = vmatpush3.bf16.msra.mxu0 %v3455_v24  ;;  %3488 = vmatpush3.bf16.msra.mxu1 %v3487_v47 }
 0xc1c   : > { %3458 = vmatprep.subr.bf16.mxu0 %v3457_v51  ;;  %3490 = vmatprep.subr.bf16.mxu1 %v3489_v37 }
 0xc1f   : > { %3460 = vmatpush3.bf16.msra.mxu0 %v3459_v29  ;;  %3492 = vmatpush3.bf16.msra.mxu1 %v3491_v46 }
 0xc20   : > { %3462 = vmatprep.subr.bf16.mxu0 %v3461_v56  ;;  %3494 = vmatprep.subr.bf16.mxu1 %v3493_v59 }
 0xc23   : > { %3464 = vmatpush3.bf16.msra.mxu0 %v3463_v52  ;;  %3496 = vmatpush3.bf16.msra.mxu1 %v3495_v63 }
 0xcd9   : > { %v5021_v1 = vpop.f32.mrb[10].mxu0  ;;  %v5023_v2 = vpop.f32.mrb[10].mxu1 }
 0xcda   : > { %v5026_v4 = vmul.f32 0.70710677, %v5021_v1  ;;  %v5029_v5 = vmul.f32 0.70710677, %v5023_v2  ;;  %v5031_v57 = vpop.f32.mrb[11].mxu0  ;;  %v5033_v7 = vpop.f32.mrb[11].mxu1 }
 0xcdb   : > { %v5038_v12 = vmul.f32 0.70710677, %v5031_v57  ;;  %v5041_v13 = vmul.f32 0.70710677, %v5033_v7 }
 0xcdc   : > { %v2132_v9 = vand.u32 2147483647, %v5026_v4  ;;  %v2134_v11 = vand.u32 2147483647, %v5029_v5  ;;  %vm2212_vm3 = vcmp.lt.f32.partialorder %v5026_v4, 0.0  ;;  %vm2214_vm4 = vcmp.lt.f32.partialorder %v5029_v5, 0.0 }
 0xcdd   : > { %v2133_v15 = vand.u32 2147483647, %v5038_v12  ;;  %v2135_v16 = vand.u32 2147483647, %v5041_v13  ;;  %vm2213_vm5 = vcmp.lt.f32.partialorder %v5038_v12, 0.0  ;;  %vm2215_vm6 = vcmp.lt.f32.partialorder %v5041_v13, 0.0 }
 0xcde   : > { %v2136_v14 = vmul.f32 0.3275911, %v2132_v9  ;;  %v2138_v54 = vmul.f32 0.3275911, %v2134_v11  ;;  %v2188_v22 = vsub.f32 0.0, %v2132_v9  ;;  %v2190_v23 = vsub.f32 0.0, %v2134_v11 }
 0xcdf   : > { %v2137_v19 = vmul.f32 0.3275911, %v2133_v15  ;;  %v2139_v20 = vmul.f32 0.3275911, %v2135_v16  ;;  %v2189_v27 = vsub.f32 0.0, %v2133_v15  ;;  %v2191_v35 = vsub.f32 0.0, %v2135_v16 }
 0xce0   : > { %v2140_v17 = vadd.f32 1.0, %v2136_v14  ;;  %v2142_v18 = vadd.f32 1.0, %v2138_v54  ;;  %v2192_v26 = vmul.f32 %v2188_v22, %v2132_v9  ;;  %v2194_v32 = vmul.f32 %v2190_v23, %v2134_v11 }
 0xce1   : > { %v2141_v21 = vadd.f32 1.0, %v2137_v19  ;;  %v2143_v3 = vadd.f32 1.0, %v2139_v20  ;;  %v2193_v42 = vmul.f32 %v2189_v27, %v2133_v15  ;;  %v2195_v48 = vmul.f32 %v2191_v35, %v2135_v16 }
 0xce2   : > { %3652 = vrcp.f32 %v2140_v17  ;;  %v2196_v39 = vmul.f32 1.442695, %v2192_v26  ;;  %v2200_v44 = vmul.f32 1.442695, %v2194_v32  ;;  %v2124_v4 = vmul.f32 0.5, %v5021_v1 }
 0xce3   : > { %3654 = vrcp.f32 %v2142_v18  ;;  %v2198_v34 = vmul.f32 1.442695, %v2193_v42  ;;  %v2202_v46 = vmul.f32 1.442695, %v2195_v48  ;;  %v2127_v5 = vmul.f32 0.5, %v5033_v7 }
 0xce4   : > { %3656 = vrcp.f32 %v2141_v21  ;;  %v2126_v12 = vmul.f32 0.5, %v5023_v2 }
 0xce5   : > { %3658 = vrcp.f32 %v2143_v3 }
 0xce6   : > { %3660 = vpow2.f32 %v2196_v39 }
 0xce7   : > { %3662 = vpow2.f32 %v2200_v44 }
 0xce8   : > { %3664 = vpow2.f32 %v2198_v34 }
 0xce9   : > { %3666 = vpow2.f32 %v2202_v46 }
 0xcec   : > { %v3653_v25 = vpop.eup %3652 }
 0xced   : > { %v3655_v28 = vpop.eup %3654  ;;  %v2152_v31 = vmul.f32 1.0614054, %v3653_v25 }
 0xcee   : > { %v2154_v33 = vmul.f32 1.0614054, %v3655_v28  ;;  %v3657_v38 = vpop.eup %3656 }
 0xcef   : > { %v2156_v36 = vadd.f32 -1.4531521, %v2152_v31  ;;  %v2153_v45 = vmul.f32 1.0614054, %v3657_v38  ;;  %v3659_v47 = vpop.eup %3658 }
 0xcf0   : > { %v2158_v41 = vadd.f32 -1.4531521, %v2154_v33  ;;  %v2155_v8 = vmul.f32 1.0614054, %v3659_v47  ;;  %v3661_v54 = vpop.eup %3660 }
 0xcf1   : > { %v2160_v24 = vmul.f32 %v3653_v25, %v2156_v36  ;;  %v2157_v51 = vadd.f32 -1.4531521, %v2153_v45  ;;  %v3663_v16 = vpop.eup %3662  ;;  %v2125_v45 = vmul.f32 0.5, %v5031_v57 }
 0xcf2   : > { %v2162_v0 = vmul.f32 %v3655_v28, %v2158_v41  ;;  %v2159_v43 = vadd.f32 -1.4531521, %v2155_v8  ;;  %v3665_v23 = vpop.eup %3664 }
 0xcf3   : > { %v2164_v50 = vadd.f32 1.4214138, %v2160_v24  ;;  %v2161_v29 = vmul.f32 %v3657_v38, %v2157_v51  ;;  %v3667_v33 = vpop.eup %3666 }
 0xcf4   : > { %v2166_v30 = vadd.f32 1.4214138, %v2162_v0  ;;  %v2163_v49 = vmul.f32 %v3659_v47, %v2159_v43 }
 0xcf5   : > { %v2168_v37 = vmul.f32 %v3653_v25, %v2164_v50  ;;  %v2165_v60 = vadd.f32 1.4214138, %v2161_v29 }
 0xcf6   : > { %v2170_v53 = vmul.f32 %v3655_v28, %v2166_v30  ;;  %v2167_v10 = vadd.f32 1.4214138, %v2163_v49 }
 0xcf7   : > { %v2172_v55 = vadd.f32 -0.28449672, %v2168_v37  ;;  %v2169_v58 = vmul.f32 %v3657_v38, %v2165_v60 }
 0xcf8   : > { %v2174_v56 = vadd.f32 -0.28449672, %v2170_v53  ;;  %v2171_v62 = vmul.f32 %v3659_v47, %v2167_v10 }
 0xcf9   : > { %v2176_v6 = vmul.f32 %v3653_v25, %v2172_v55  ;;  %v2173_v61 = vadd.f32 -0.28449672, %v2169_v58 }
 0xcfa   : > { %v2178_v59 = vmul.f32 %v3655_v28, %v2174_v56  ;;  %v2175_v14 = vadd.f32 -0.28449672, %v2171_v62 }
 0xcfb   : > { %v2180_v52 = vadd.f32 0.2548296, %v2176_v6  ;;  %v2177_v11 = vmul.f32 %v3657_v38, %v2173_v61 }
 0xcfc   : > { %v2182_v63 = vadd.f32 0.2548296, %v2178_v59  ;;  %v2179_v19 = vmul.f32 %v3659_v47, %v2175_v14 }
 0xcfd   : > { %v2184_v9 = vmul.f32 %v3653_v25, %v2180_v52  ;;  %v2181_v18 = vadd.f32 0.2548296, %v2177_v11 }
 0xcfe   : > { %v2186_v15 = vmul.f32 %v3655_v28, %v2182_v63  ;;  %v2183_v22 = vadd.f32 0.2548296, %v2179_v19 }
 0xcff   : > { %v2204_v17 = vmul.f32 %v3661_v54, %v2184_v9  ;;  %v2185_v3 = vmul.f32 %v3657_v38, %v2181_v18 }
 0xd00   : > { %v2206_v20 = vmul.f32 %v3663_v16, %v2186_v15  ;;  %v2187_v32 = vmul.f32 %v3659_v47, %v2183_v22 }
 0xd01   : > { %v2208_v21 = vsub.f32 1.0, %v2204_v17  ;;  %v2205_v31 = vmul.f32 %v3665_v23, %v2185_v3 }
 0xd02   : > { %v2210_v26 = vsub.f32 1.0, %v2206_v20  ;;  %v2207_v36 = vmul.f32 %v3667_v33, %v2187_v32 }
 0xd03   : > { %v2216_v27 = vsub.f32 0.0, %v2208_v21  ;;  %v2209_v25 = vsub.f32 1.0, %v2205_v31 }
 0xd04   : > { %v2218_v35 = vsub.f32 0.0, %v2210_v26  ;;  %v2211_v41 = vsub.f32 1.0, %v2207_v36 }
 0xd05   : > { %v2220_v28 = vsel %vm2212_vm3, %v2216_v27, %v2208_v21  ;;  %v2217_v39 = vsub.f32 0.0, %v2209_v25 }
 0xd06   : > { %v2222_v42 = vsel %vm2214_vm4, %v2218_v35, %v2210_v26  ;;  %v2224_v38 = vadd.f32 1.0, %v2220_v28  ;;  %v2219_v44 = vsub.f32 0.0, %v2211_v41 }
 0xd07   : > { %v2221_v24 = vsel %vm2213_vm5, %v2217_v39, %v2209_v25  ;;  %v2226_v0 = vadd.f32 1.0, %v2222_v42 }
 0xd08   : > { %v2225_v47 = vadd.f32 1.0, %v2221_v24  ;;  %v2223_v48 = vsel %vm2215_vm6, %v2219_v44, %v2211_v41  ;;  %v2228_v8 = vmul.f32 %v2224_v38, %v2124_v4 }
 0xd09   : > { %v2227_v51 = vadd.f32 1.0, %v2223_v48  ;;  %v2230_v34 = vmul.f32 %v2226_v0, %v2126_v12 }
 0xd0a   : > { %v2229_v50 = vmul.f32 %v2225_v47, %v2125_v45 }
 0xd0b   : > { %v2231_v30 = vmul.f32 %v2227_v51, %v2127_v5 }
 0xd0c   : > { %2360 = vmatprep.mubr.f32.mxu0 %v2229_v50 }
 0xd0d   : > { %2361 = vmatmul.mubr.f32.vlgmr.msra.gmra.mrb[12].mxu0 %v2228_v8  ;;  %2430 = vmatprep.mubr.f32.mxu1 %v2231_v30 }
 0xd0e   : > { %2431 = vmatmul.mubr.f32.vlgmr.msra.gmra.mrb[12].mxu1 %v2230_v34 }
 0xde0   : > { %v2903_v1 = vpop.f32.mrb[12].mxu0 }
 0xde1   : > { %v2904_v57 = vpop.f32.mrb[13].mxu0  ;;  %v2938_v13 = vpop.f32.mrb[12].mxu1 }
 0xde2   : > { %v2905_v37 = vadd.f32 %v2904_v57, %v2903_v1  ;;  %v2939_v7 = vpop.f32.mrb[13].mxu1 }
 0xde3   : > { %v2940_v29 = vadd.f32 %v2939_v7, %v2938_v13 }
 0xde5   : > { %v2433_v43 = vadd.f32 %v2940_v29, %v2905_v37 }
 0xde7   : > { %v2436_v2 = vadd.f32 %v2433_v43, %v4874_v40 }
 0xde9   : > { %2437 = vst [vmem:[%s4517_s30] sm:$0xff] %v2436_v2 }
 0xdea   : > { %3861 = shalt.err (!%p3858_p10)
}
 0xdeb   : > { %s3862_s30 = scalar_lea.hbm %s5059_s11, 128  ;;  %s3866_s1 = scalar_lea.hbm %s5257_s22, 256 }
 0xdec   : > { %p3863_p5 = scmp.ne.s32.totalorder %s5059_s11, %s3862_s30  ;;  %p3867_p4 = scmp.lt.u32.totalorder %s5059_s11, %s5257_s22 }
 0xded   : > { %p3868_p11 = scmp.lt.u32.totalorder %s3866_s1, %s3862_s30  ;;  %p3870_p3 = scmp.lt.u32.totalorder %s3862_s30, %s5059_s11 }
 0xdee   : > { %p3864_p6 = pnand %p3863_p5, %p5259_p8 }
 0xdef   : > { %p3869_p12 = por %p3868_p11, %p3867_p4 }
 0xdf0   : > { %p3865_p7 = pneg %p3864_p6 }
 0xdf1   : > { %p3871_p9 = por %p3870_p3, %p3869_p12 }
 0xdf3   : > { %p3872_p1 = pnand %p3871_p9, %p3865_p7 }
 0xdf5   : > { %3875 = shalt.err (!%p3872_p1)
}
 0xdf6   : > { %3514 = dma.vmem_to_hbm [thread:$0]  (%p5259_p8), %s5061_s20, 128, %s5059_s11, %s2439_s13  }
 0xdf7 PF: > { %s5260_s0 = sld [smem:[#allocation28_spill]]  ;;  %s5261_s18 = sld [smem:[#allocation19_spill]] }
 0xdf8   : > { %s5262_s14 = sld [smem:[#allocation34_spill]] }
 0xdfd   : > { %p3540_p2 = scmp.ge.s32.totalorder %s5260_s0, 2  ;;  %s2464_s21 = sand.u32 1, %s5261_s18  }
 0xdfe   : > { %p5263_p0 = scmp.ne.s32.totalorder %s5262_s14, 0  ;;  %s2465_s29 = scalar_lea.sflag [#allocation4], %s2464_s21 }
 0xe00   : > { %p3536_p13 = pnand %p3540_p2, %p5263_p0 }
 0xe02   : > { %3937 = dma.done.wait (!%p3536_p13), %s2465_s29, 128  }
 0xe03   : > { %3939 = vsyncadd (!%p3536_p13), %s2465_s29, 4294967168  ;;  %s42_s1 = sadd.s32 1, %s5260_s0   ;;  %s5264_s24 = sld [smem:[#allocation20_spill]] }
 0xe04   : > { %p39_p10 = scmp.ge.s32.totalorder %s42_s1, 6   ;;  %s5265_s25 = sld [smem:[#allocation21_spill]] }
 0xe05   : > { %s5266_s26 = sld [smem:[#allocation32_spill]]  ;;  %s5267_s27 = sld [smem:[#allocation22_spill]] }
 0xe06   : > { %s5268_s28 = sld [smem:[#allocation23_spill]]  ;;  %s5269_s29 = sld [smem:[#allocation31_spill]] }
 0xe07   : > { %s5270_s0 = sld [smem:[#allocation26_spill]]  ;;  %s5271_s30 = sld [smem:[#allocation27_spill]] }
 0xe08   : > { %s5272_s18 = sld [smem:[#allocation29_spill]]  ;;  %s5273_s19 = sld [smem:[#allocation30_spill]] }
 0xe09   :  { %41 = sbr.rel (!%p39_p10) target bundleno = 34 (0x22), region = 222 }
 0xe10   :  { %2470 = vsyncpa [#allocation3], 1 }
 0xe11   :  { %2472 = vsyncpa [#allocation3 + $0x1], 1 }
 0xe12   :  { %2473 = vsyncpa [#allocation6], 1 }
 0xe13   :  { %2475 = vsyncpa [#allocation6 + $0x1], 1 }
 0xe14   :  { %2476 = vsyncpa [#allocation9], 1 }
 0xe15   :  { %2478 = vsyncpa [#allocation9 + $0x1], 1 }
 0xe16   :  { %2479 = vsyncpa [#allocation12], 1 }
 0xe17   :  { %2481 = vsyncpa [#allocation12 + $0x1], 1 }
 0xe18   :  { %2482 = vsyncpa [#allocation4], 1 }
 0xe19   :  { %2484 = vsyncpa [#allocation4 + $0x1], 1 }

</bundles_post_ra>
